<compile_context>
chip_gen: v7x
topology: tpu7x:2x2x1
jax: 0.10.0
libtpu: 0.0.40
codegen_flags: <defaults>
</compile_context>

<pallas_src>
import jax
import jax.numpy as jnp
from jax import lax
from jax.experimental import pallas as pl
from jax.experimental.pallas import tpu as pltpu


# ----------------------------------------------------------------------------------------------
# Pallas kernel: LinearEncoder + LinearCRF (unlabeled forward score and labeled gold-path score)
# for one batch block of BB sequences.
# ----------------------------------------------------------------------------------------------
def crf_kernel(seq_ref,        # VMEM (BB, 1)       int32  sequence lengths
               labels_ref,     # VMEM (BB, L)       int32  gold labels
               x_ref,          # VMEM (1, BB*L, D)  bf16   word_rep, time-major inside the block
               w_ref,          # VMEM (D, T)        bf16   LinearEncoder weight
               b_ref,          # VMEM (1, T)        f32    LinearEncoder bias
               trans_ref,      # VMEM (T, T)        f32    CRF transitions trans[i, j] = i -> j
               exp_trans_ref,  # VMEM (T, T)        f32    exp(trans - colmax)
               colmax_ref,     # VMEM (1, T)        f32    per-column max of trans
               tstart_ref,     # VMEM (1, T)        f32    trans[start, :]
               tend_ref,       # VMEM (1, T)        f32    trans[:, end]
               out_ref):       # VMEM (BB, 2)       f32    [:, 0] = unlabeled, [:, 1] = labeled
    BB, L = labels_ref.shape
    T = w_ref.shape[1]

    seq = seq_ref[...]                                   # (BB, 1) int32
    labels = labels_ref[...]                             # (BB, L) int32
    bias = b_ref[...]                                    # (1, T)
    trans = trans_ref[...]                               # (T, T)
    exp_trans = exp_trans_ref[...]                       # (T, T)
    colmax = colmax_ref[...]                             # (1, T)
    t_start = tstart_ref[...]                            # (1, T)
    t_end = tend_ref[...]                                # (1, T)

    # ---- LinearEncoder: one flattened (BB*L, D) @ (D, T) bf16 MXU matmul, f32 accumulate ----
    x2 = x_ref[0]                                        # (BB*L, D) bf16, row = t*BB + b
    em = jnp.dot(x2, w_ref[...], preferred_element_type=jnp.float32) + bias   # (BB*L, T) f32

    lane_iota = lax.broadcasted_iota(jnp.int32, (BB, T), 1)

    def em_at(t):                                        # (BB, T) emission at time t (static slice)
        return em[t * BB:(t + 1) * BB, :]

    def onehot_at(t):                                    # (BB, T) one-hot of gold label at time t
        return (lane_iota == labels[:, t:t + 1]).astype(jnp.float32)

    # ---- t = 0 ----
    oh = onehot_at(0)
    em0 = em_at(0)
    alpha = t_start + em0                                # (BB, T) CRF forward scores
    gold = jnp.sum((em0 + t_start) * oh, axis=-1, keepdims=True)          # emission + begin trans
    end_score = jnp.where(seq == 1,
                          jnp.sum(t_end * oh, axis=-1, keepdims=True), 0.0)
    trans_row_prev = jnp.dot(oh, trans, preferred_element_type=jnp.float32)   # trans[tag_{t-1}, :]

    # ---- unrolled time recurrence (L is small and static) ----
    for t in range(1, L):
        em_t = em_at(t)
        oh = onehot_at(t)
        active = seq > t                                 # (BB, 1): position t inside the sequence

        # forward: alpha_new[j] = logsumexp_i(alpha[i] + trans[i, j]) + em_t[j]
        # stable: shift by per-row max(alpha) and per-column max(trans) (colmax hoisted).
        m = jnp.max(alpha, axis=-1, keepdims=True)
        s = jnp.dot(jnp.exp(alpha - m), exp_trans, preferred_element_type=jnp.float32)
        alpha_new = m + colmax + jnp.log(s) + em_t
        alpha = jnp.where(active, alpha_new, alpha)      # freeze past the sequence end

        # gold path: emission[t, tag_t] + trans[tag_{t-1}, tag_t]
        step = jnp.sum((em_t + trans_row_prev) * oh, axis=-1, keepdims=True)
        gold = gold + jnp.where(active, step, 0.0)
        trans_row_prev = jnp.dot(oh, trans, preferred_element_type=jnp.float32)
        end_score = end_score + jnp.where(
            seq == t + 1, jnp.sum(t_end * oh, axis=-1, keepdims=True), 0.0)

    # ---- finalize ----
    final = alpha + t_end
    m = jnp.max(final, axis=-1, keepdims=True)
    unlab = m + jnp.log(jnp.sum(jnp.exp(final - m), axis=-1, keepdims=True))  # (BB, 1)
    lab = gold + end_score                                                    # (BB, 1)

    col = lax.broadcasted_iota(jnp.int32, (BB, 2), 1)
    out_ref[...] = jnp.where(col == 0, unlab, lab)       # single (BB, 2) store


def crf_loss_pallas(word_rep, word_seq_lens, labels, W_enc, b_enc, trans,
                    start_idx, end_idx, block_b=8):
    """Returns unlabeled_score - labeled_score, summed over the batch (scalar)."""
    B, L, D = word_rep.shape
    T = W_enc.shape[1]
    BB = block_b
    nb = pl.cdiv(B, BB)
    B_pad = nb * BB
    pad = B_pad - B

    # batch padding (padded rows: zero features, labels 0, seq_len 1; dropped after the kernel)
    wr = jnp.pad(word_rep, ((0, pad), (0, 0), (0, 0)))
    labels_p = jnp.pad(labels.astype(jnp.int32), ((0, pad), (0, 0)))
    seq_p = jnp.pad(word_seq_lens.astype(jnp.int32), ((0, pad),), constant_values=1)

    # bf16 + time-major layout inside each batch block so the kernel slices contiguous (BB, T)
    # emission slabs with static, aligned offsets (no in-kernel relayout / scratch).
    wr = (wr.astype(jnp.bfloat16)
            .reshape(nb, BB, L, D)
            .transpose(0, 2, 1, 3)
            .reshape(nb, L * BB, D))
    w_bf = W_enc.astype(jnp.bfloat16)
    bias = b_enc.astype(jnp.float32)[None, :]                      # (1, T)
    trans_f = trans.astype(jnp.float32)
    colmax = jnp.max(trans_f, axis=0, keepdims=True)               # (1, T)  hoisted
    exp_trans = jnp.exp(trans_f - colmax)                          # (T, T)  hoisted
    t_start = trans_f[start_idx][None, :]                          # (1, T)
    t_end = trans_f[:, end_idx][None, :]                           # (1, T)
    seq2 = seq_p[:, None]                                          # (B_pad, 1)

    grid_spec = pltpu.PrefetchScalarGridSpec(
        num_scalar_prefetch=0,
        grid=(nb,),
        in_specs=[
            pl.BlockSpec((BB, 1), lambda i: (i, 0)),               # seq lens
            pl.BlockSpec((BB, L), lambda i: (i, 0)),               # int32 labels
            pl.BlockSpec((1, L * BB, D), lambda i: (i, 0, 0)),     # word_rep (time-major block)
            pl.BlockSpec((D, T), lambda i: (0, 0)),                # W (bf16, invariant)
            pl.BlockSpec((1, T), lambda i: (0, 0)),                # bias
            pl.BlockSpec((T, T), lambda i: (0, 0)),                # trans
            pl.BlockSpec((T, T), lambda i: (0, 0)),                # exp(trans - colmax)
            pl.BlockSpec((1, T), lambda i: (0, 0)),                # colmax
            pl.BlockSpec((1, T), lambda i: (0, 0)),                # trans[start, :]
            pl.BlockSpec((1, T), lambda i: (0, 0)),                # trans[:, end]
        ],
        out_specs=pl.BlockSpec((BB, 2), lambda i: (i, 0)),
    )

    out = pl.pallas_call(
        crf_kernel,
        grid_spec=grid_spec,
        out_shape=jax.ShapeDtypeStruct((B_pad, 2), jnp.float32),
        compiler_params=pltpu.CompilerParams(dimension_semantics=("parallel",)),
    )(seq2, labels_p, wr, w_bf, bias, trans_f, exp_trans, colmax, t_start, t_end)

    out = out[:B]                                                  # drop padded batch rows
    return jnp.sum(out[:, 0]) - jnp.sum(out[:, 1])


# ----------------------------------------------------------------------------------------------
# Glue: synthetic TransformersEmbedder (embedding lookup + word-index gather)
# ----------------------------------------------------------------------------------------------
def synthetic_transformer_embedder(emb_table, subword_ids, orig_to_tok_index, attention_mask):
    B, L = orig_to_tok_index.shape
    D = emb_table.shape[1]
    sub_rep = emb_table[subword_ids] * attention_mask[..., None].astype(emb_table.dtype)  # (B, S, D)
    idx = jnp.broadcast_to(orig_to_tok_index[..., None], (B, L, D))
    word_rep = jnp.take_along_axis(sub_rep, idx, axis=1)                                  # (B, L, D)
    return word_rep


# ----------------------------------------------------------------------------------------------
# Pure-JAX reference (same math; emission uses the same bf16-rounded inputs as the kernel)
# ----------------------------------------------------------------------------------------------
def crf_loss_reference(word_rep, seq_lens, labels, W, b, trans, start_idx, end_idx):
    wr = word_rep.astype(jnp.bfloat16).astype(jnp.float32)
    Wf = W.astype(jnp.bfloat16).astype(jnp.float32)
    emission = wr @ Wf + b                                          # (B, L, T)
    B, L, T = emission.shape

    def per_batch(em, ln, tags):
        alpha0 = trans[start_idx] + em[0]

        def step(t, carry):
            alpha, last = carry
            scores = alpha[:, None] + trans + em[t][None, :]
            new = jax.nn.logsumexp(scores, axis=0)
            last = jnp.where(t == ln - 1, new, last)
            return new, last

        _, last = lax.fori_loop(1, L, step, (alpha0, alpha0))
        unlab = jax.nn.logsumexp(last + trans[:, end_idx])

        em_gold = em[jnp.arange(L), tags]
        tr_mid = trans[tags[:-1], tags[1:]]
        em_mask = jnp.arange(L) < ln
        mid_mask = jnp.arange(1, L) < ln
        labeled = (jnp.sum(jnp.where(em_mask, em_gold, 0.0))
                   + jnp.sum(jnp.where(mid_mask, tr_mid, 0.0))
                   + trans[start_idx, tags[0]]
                   + trans[tags[ln - 1], end_idx])
        return unlab, labeled

    unlab, lab = jax.vmap(per_batch)(emission, seq_lens, labels)
    return jnp.sum(unlab) - jnp.sum(lab)


if __name__ == "__main__":
    # Small shapes consistent with the module's forward
    B, S, L, D = 2, 12, 8, 32          # batch, subword len, word len (sent_len), transformer dim
    V = 100                            # synthetic vocab
    NUM_REAL = 9
    T = NUM_REAL + 3                   # label_size incl. START / STOP / PAD
    START_IDX, END_IDX, PAD_IDX = T - 3, T - 2, T - 1

    key = jax.random.PRNGKey(0)
    k_emb, k_w, k_b, k_tr, k_sub, k_o2t, k_lab = jax.random.split(key, 7)

    # deterministic parameter init (synthetic; no checkpoint load)
    emb_table = 0.02 * jax.random.normal(k_emb, (V, D), dtype=jnp.float32)
    W_enc = jax.random.normal(k_w, (D, T), dtype=jnp.float32) / jnp.sqrt(D)
    b_enc = 0.1 * jax.random.normal(k_b, (T,), dtype=jnp.float32)
    trans = jax.random.normal(k_tr, (T, T), dtype=jnp.float32)
    # LinearCRF constraints (as in the reference implementation)
    trans = trans.at[:, START_IDX].set(-10000.0)
    trans = trans.at[END_IDX, :].set(-10000.0)
    trans = trans.at[:, PAD_IDX].set(-10000.0)
    trans = trans.at[PAD_IDX, :].set(-10000.0)

    # inputs
    subword_input_ids = jax.random.randint(k_sub, (B, S), 1, V, dtype=jnp.int32)
    attention_mask = jnp.ones((B, S), dtype=jnp.int32)
    orig_to_tok_index = jax.random.randint(k_o2t, (B, L), 0, S, dtype=jnp.int32)
    word_seq_lens = jnp.array([8, 5], dtype=jnp.int32)
    labels = jax.random.randint(k_lab, (B, L), 0, NUM_REAL, dtype=jnp.int32)

    # forward: embedder (glue) -> fused LinearEncoder + CRF Pallas kernel
    word_rep = synthetic_transformer_embedder(emb_table, subword_input_ids,
                                              orig_to_tok_index, attention_mask)
    loss = crf_loss_pallas(word_rep, word_seq_lens, labels, W_enc, b_enc,
                           trans, START_IDX, END_IDX)
    loss = jax.block_until_ready(loss)

    # correctness check against pure-JAX reference
    ref = crf_loss_reference(word_rep, word_seq_lens, labels, W_enc, b_enc,
                             trans, START_IDX, END_IDX)
    ref = jax.block_until_ready(ref)
    assert jnp.allclose(loss, ref, rtol=1e-3, atol=5e-2), (loss, ref)

    print("KERNEL_OK")
</pallas_src>

<mosaic_0001>
module attributes {stable_mosaic.version = 11 : i64} {
  func.func @crf_kernel(%arg0: i32, %arg1: memref<8x1xi32, #tpu.memory_space<vmem>>, %arg2: memref<8x8xi32, #tpu.memory_space<vmem>>, %arg3: memref<1x64x32xbf16, #tpu.memory_space<vmem>>, %arg4: memref<32x12xbf16, #tpu.memory_space<vmem>>, %arg5: memref<1x12xf32, #tpu.memory_space<vmem>>, %arg6: memref<12x12xf32, #tpu.memory_space<vmem>>, %arg7: memref<12x12xf32, #tpu.memory_space<vmem>>, %arg8: memref<1x12xf32, #tpu.memory_space<vmem>>, %arg9: memref<1x12xf32, #tpu.memory_space<vmem>>, %arg10: memref<1x12xf32, #tpu.memory_space<vmem>>, %arg11: memref<8x2xf32, #tpu.memory_space<vmem>>) attributes {dimension_semantics = [#tpu.dimension_semantics<parallel>], iteration_bounds = array<i64: 1>, scalar_prefetch = 0 : i64, scratch_operands = 0 : i64, tpu.core_type = #tpu.core_type<tc>, window_params = [{transform_indices = @transform_0, window_bounds = array<i64: 8, 1>}, {transform_indices = @transform_1, window_bounds = array<i64: 8, 8>}, {transform_indices = @transform_2, window_bounds = array<i64: 1, 64, 32>}, {pipeline_mode = #tpu.pipeline_mode<synchronous>, transform_indices = @transform_3, window_bounds = array<i64: 32, 12>}, {pipeline_mode = #tpu.pipeline_mode<synchronous>, transform_indices = @transform_4, window_bounds = array<i64: 1, 12>}, {pipeline_mode = #tpu.pipeline_mode<synchronous>, transform_indices = @transform_5, window_bounds = array<i64: 12, 12>}, {pipeline_mode = #tpu.pipeline_mode<synchronous>, transform_indices = @transform_6, window_bounds = array<i64: 12, 12>}, {pipeline_mode = #tpu.pipeline_mode<synchronous>, transform_indices = @transform_7, window_bounds = array<i64: 1, 12>}, {pipeline_mode = #tpu.pipeline_mode<synchronous>, transform_indices = @transform_8, window_bounds = array<i64: 1, 12>}, {pipeline_mode = #tpu.pipeline_mode<synchronous>, transform_indices = @transform_9, window_bounds = array<i64: 1, 12>}, {transform_indices = @transform_10, window_bounds = array<i64: 8, 2>}]} {
    %c0 = arith.constant 0 : index
    %c0_0 = arith.constant 0 : index
    %0 = vector.load %arg1[%c0, %c0_0] : memref<8x1xi32, #tpu.memory_space<vmem>>, vector<8x1xi32>
    %c0_1 = arith.constant 0 : index
    %c0_2 = arith.constant 0 : index
    %1 = vector.load %arg2[%c0_1, %c0_2] : memref<8x8xi32, #tpu.memory_space<vmem>>, vector<8x8xi32>
    %c0_3 = arith.constant 0 : index
    %c0_4 = arith.constant 0 : index
    %2 = vector.load %arg5[%c0_3, %c0_4] : memref<1x12xf32, #tpu.memory_space<vmem>>, vector<1x12xf32>
    %c0_5 = arith.constant 0 : index
    %c0_6 = arith.constant 0 : index
    %3 = vector.load %arg6[%c0_5, %c0_6] : memref<12x12xf32, #tpu.memory_space<vmem>>, vector<12x12xf32>
    %c0_7 = arith.constant 0 : index
    %c0_8 = arith.constant 0 : index
    %4 = vector.load %arg7[%c0_7, %c0_8] : memref<12x12xf32, #tpu.memory_space<vmem>>, vector<12x12xf32>
    %c0_9 = arith.constant 0 : index
    %c0_10 = arith.constant 0 : index
    %5 = vector.load %arg8[%c0_9, %c0_10] : memref<1x12xf32, #tpu.memory_space<vmem>>, vector<1x12xf32>
    %c0_11 = arith.constant 0 : index
    %c0_12 = arith.constant 0 : index
    %6 = vector.load %arg9[%c0_11, %c0_12] : memref<1x12xf32, #tpu.memory_space<vmem>>, vector<1x12xf32>
    %c0_13 = arith.constant 0 : index
    %c0_14 = arith.constant 0 : index
    %7 = vector.load %arg10[%c0_13, %c0_14] : memref<1x12xf32, #tpu.memory_space<vmem>>, vector<1x12xf32>
    %c0_15 = arith.constant 0 : index
    %c0_16 = arith.constant 0 : index
    %c0_17 = arith.constant 0 : index
    %8 = vector.load %arg3[%c0_15, %c0_16, %c0_17] : memref<1x64x32xbf16, #tpu.memory_space<vmem>>, vector<1x64x32xbf16>
    %9 = vector.shape_cast %8 : vector<1x64x32xbf16> to vector<64x32xbf16>
    %c0_18 = arith.constant 0 : index
    %c0_19 = arith.constant 0 : index
    %10 = vector.load %arg4[%c0_18, %c0_19] : memref<32x12xbf16, #tpu.memory_space<vmem>>, vector<32x12xbf16>
    %cst = arith.constant dense<0.000000e+00> : vector<64x12xf32>
    %11 = tpu.matmul %9, %10, %cst {dimension_numbers = #tpu.dot_dimension_numbers<[1], [0], [0], [1], [0, 0, 1, 1], [], []>} : vector<64x32xbf16>, vector<32x12xbf16>, vector<64x12xf32> -> vector<64x12xf32>
    %12 = vector.broadcast %2 : vector<1x12xf32> to vector<64x12xf32>
    %13 = arith.addf %11, %12 : vector<64x12xf32>
    %14 = tpu.iota {dimensions = array<i32: 1>} : vector<8x12xi32>
    %15 = vector.extract_strided_slice %1 {offsets = [0, 0], sizes = [8, 1], strides = [1, 1]} : vector<8x8xi32> to vector<8x1xi32>
    %16 = vector.broadcast %15 : vector<8x1xi32> to vector<8x12xi32>
    %17 = arith.cmpi eq, %14, %16 : vector<8x12xi32>
    %18 = arith.extui %17 : vector<8x12xi1> to vector<8x12xi32>
    %19 = arith.sitofp %18 : vector<8x12xi32> to vector<8x12xf32>
    %20 = vector.extract_strided_slice %13 {offsets = [0, 0], sizes = [8, 12], strides = [1, 1]} : vector<64x12xf32> to vector<8x12xf32>
    %21 = vector.broadcast %6 : vector<1x12xf32> to vector<8x12xf32>
    %22 = arith.addf %21, %20 : vector<8x12xf32>
    %23 = vector.broadcast %6 : vector<1x12xf32> to vector<8x12xf32>
    %24 = arith.addf %20, %23 : vector<8x12xf32>
    %25 = arith.mulf %24, %19 : vector<8x12xf32>
    %cst_20 = arith.constant dense<0.000000e+00> : vector<8xf32>
    %26 = vector.multi_reduction <add>, %25, %cst_20 [1] : vector<8x12xf32> to vector<8xf32>
    %27 = vector.shape_cast %26 : vector<8xf32> to vector<8x1xf32>
    %c1_i32 = arith.constant 1 : i32
    %28 = vector.broadcast %c1_i32 : i32 to vector<8x1xi32>
    %29 = arith.cmpi eq, %0, %28 : vector<8x1xi32>
    %30 = vector.broadcast %7 : vector<1x12xf32> to vector<8x12xf32>
    %31 = arith.mulf %30, %19 : vector<8x12xf32>
    %cst_21 = arith.constant dense<0.000000e+00> : vector<8xf32>
    %32 = vector.multi_reduction <add>, %31, %cst_21 [1] : vector<8x12xf32> to vector<8xf32>
    %33 = vector.shape_cast %32 : vector<8xf32> to vector<8x1xf32>
    %cst_22 = arith.constant 0.000000e+00 : f32
    %34 = vector.broadcast %cst_22 : f32 to vector<8x1xf32>
    %35 = arith.select %29, %33, %34 : vector<8x1xi1>, vector<8x1xf32>
    %cst_23 = arith.constant dense<0.000000e+00> : vector<8x12xf32>
    %36 = tpu.matmul %19, %3, %cst_23 {dimension_numbers = #tpu.dot_dimension_numbers<[1], [0], [0], [1], [0, 0, 1, 1], [], []>} : vector<8x12xf32>, vector<12x12xf32>, vector<8x12xf32> -> vector<8x12xf32>
    %37 = vector.extract_strided_slice %13 {offsets = [8, 0], sizes = [8, 12], strides = [1, 1]} : vector<64x12xf32> to vector<8x12xf32>
    %38 = vector.extract_strided_slice %1 {offsets = [0, 1], sizes = [8, 1], strides = [1, 1]} : vector<8x8xi32> to vector<8x1xi32>
    %39 = vector.broadcast %38 : vector<8x1xi32> to vector<8x12xi32>
    %40 = arith.cmpi eq, %14, %39 : vector<8x12xi32>
    %41 = arith.extui %40 : vector<8x12xi1> to vector<8x12xi32>
    %42 = arith.sitofp %41 : vector<8x12xi32> to vector<8x12xf32>
    %c1_i32_24 = arith.constant 1 : i32
    %43 = vector.broadcast %c1_i32_24 : i32 to vector<8x1xi32>
    %44 = arith.cmpi sgt, %0, %43 : vector<8x1xi32>
    %cst_25 = arith.constant dense<0xFF800000> : vector<8xf32>
    %45 = vector.multi_reduction <maximumf>, %22, %cst_25 [1] : vector<8x12xf32> to vector<8xf32>
    %46 = vector.shape_cast %45 : vector<8xf32> to vector<8x1xf32>
    %47 = vector.broadcast %46 : vector<8x1xf32> to vector<8x12xf32>
    %48 = arith.subf %22, %47 : vector<8x12xf32>
    %49 = math.exp %48 : vector<8x12xf32>
    %cst_26 = arith.constant dense<0.000000e+00> : vector<8x12xf32>
    %50 = tpu.matmul %49, %4, %cst_26 {dimension_numbers = #tpu.dot_dimension_numbers<[1], [0], [0], [1], [0, 0, 1, 1], [], []>} : vector<8x12xf32>, vector<12x12xf32>, vector<8x12xf32> -> vector<8x12xf32>
    %51 = vector.broadcast %46 : vector<8x1xf32> to vector<8x12xf32>
    %52 = vector.broadcast %5 : vector<1x12xf32> to vector<8x12xf32>
    %53 = arith.addf %51, %52 : vector<8x12xf32>
    %54 = math.log %50 : vector<8x12xf32>
    %55 = arith.addf %53, %54 : vector<8x12xf32>
    %56 = arith.addf %55, %37 : vector<8x12xf32>
    %57 = vector.shape_cast %44 : vector<8x1xi1> to vector<8x1xi1>
    %58 = vector.broadcast %57 : vector<8x1xi1> to vector<8x12xi1>
    %59 = arith.select %58, %56, %22 : vector<8x12xi1>, vector<8x12xf32>
    %60 = arith.addf %37, %36 : vector<8x12xf32>
    %61 = arith.mulf %60, %42 : vector<8x12xf32>
    %cst_27 = arith.constant dense<0.000000e+00> : vector<8xf32>
    %62 = vector.multi_reduction <add>, %61, %cst_27 [1] : vector<8x12xf32> to vector<8xf32>
    %63 = vector.shape_cast %62 : vector<8xf32> to vector<8x1xf32>
    %cst_28 = arith.constant 0.000000e+00 : f32
    %64 = vector.broadcast %cst_28 : f32 to vector<8x1xf32>
    %65 = arith.select %44, %63, %64 : vector<8x1xi1>, vector<8x1xf32>
    %66 = arith.addf %27, %65 : vector<8x1xf32>
    %cst_29 = arith.constant dense<0.000000e+00> : vector<8x12xf32>
    %67 = tpu.matmul %42, %3, %cst_29 {dimension_numbers = #tpu.dot_dimension_numbers<[1], [0], [0], [1], [0, 0, 1, 1], [], []>} : vector<8x12xf32>, vector<12x12xf32>, vector<8x12xf32> -> vector<8x12xf32>
    %c2_i32 = arith.constant 2 : i32
    %68 = vector.broadcast %c2_i32 : i32 to vector<8x1xi32>
    %69 = arith.cmpi eq, %0, %68 : vector<8x1xi32>
    %70 = vector.broadcast %7 : vector<1x12xf32> to vector<8x12xf32>
    %71 = arith.mulf %70, %42 : vector<8x12xf32>
    %cst_30 = arith.constant dense<0.000000e+00> : vector<8xf32>
    %72 = vector.multi_reduction <add>, %71, %cst_30 [1] : vector<8x12xf32> to vector<8xf32>
    %73 = vector.shape_cast %72 : vector<8xf32> to vector<8x1xf32>
    %cst_31 = arith.constant 0.000000e+00 : f32
    %74 = vector.broadcast %cst_31 : f32 to vector<8x1xf32>
    %75 = arith.select %69, %73, %74 : vector<8x1xi1>, vector<8x1xf32>
    %76 = arith.addf %35, %75 : vector<8x1xf32>
    %77 = vector.extract_strided_slice %13 {offsets = [16, 0], sizes = [8, 12], strides = [1, 1]} : vector<64x12xf32> to vector<8x12xf32>
    %78 = vector.extract_strided_slice %1 {offsets = [0, 2], sizes = [8, 1], strides = [1, 1]} : vector<8x8xi32> to vector<8x1xi32>
    %79 = vector.broadcast %78 : vector<8x1xi32> to vector<8x12xi32>
    %80 = arith.cmpi eq, %14, %79 : vector<8x12xi32>
    %81 = arith.extui %80 : vector<8x12xi1> to vector<8x12xi32>
    %82 = arith.sitofp %81 : vector<8x12xi32> to vector<8x12xf32>
    %c2_i32_32 = arith.constant 2 : i32
    %83 = vector.broadcast %c2_i32_32 : i32 to vector<8x1xi32>
    %84 = arith.cmpi sgt, %0, %83 : vector<8x1xi32>
    %cst_33 = arith.constant dense<0xFF800000> : vector<8xf32>
    %85 = vector.multi_reduction <maximumf>, %59, %cst_33 [1] : vector<8x12xf32> to vector<8xf32>
    %86 = vector.shape_cast %85 : vector<8xf32> to vector<8x1xf32>
    %87 = vector.broadcast %86 : vector<8x1xf32> to vector<8x12xf32>
    %88 = arith.subf %59, %87 : vector<8x12xf32>
    %89 = math.exp %88 : vector<8x12xf32>
    %cst_34 = arith.constant dense<0.000000e+00> : vector<8x12xf32>
    %90 = tpu.matmul %89, %4, %cst_34 {dimension_numbers = #tpu.dot_dimension_numbers<[1], [0], [0], [1], [0, 0, 1, 1], [], []>} : vector<8x12xf32>, vector<12x12xf32>, vector<8x12xf32> -> vector<8x12xf32>
    %91 = vector.broadcast %86 : vector<8x1xf32> to vector<8x12xf32>
    %92 = vector.broadcast %5 : vector<1x12xf32> to vector<8x12xf32>
    %93 = arith.addf %91, %92 : vector<8x12xf32>
    %94 = math.log %90 : vector<8x12xf32>
    %95 = arith.addf %93, %94 : vector<8x12xf32>
    %96 = arith.addf %95, %77 : vector<8x12xf32>
    %97 = vector.shape_cast %84 : vector<8x1xi1> to vector<8x1xi1>
    %98 = vector.broadcast %97 : vector<8x1xi1> to vector<8x12xi1>
    %99 = arith.select %98, %96, %59 : vector<8x12xi1>, vector<8x12xf32>
    %100 = arith.addf %77, %67 : vector<8x12xf32>
    %101 = arith.mulf %100, %82 : vector<8x12xf32>
    %cst_35 = arith.constant dense<0.000000e+00> : vector<8xf32>
    %102 = vector.multi_reduction <add>, %101, %cst_35 [1] : vector<8x12xf32> to vector<8xf32>
    %103 = vector.shape_cast %102 : vector<8xf32> to vector<8x1xf32>
    %cst_36 = arith.constant 0.000000e+00 : f32
    %104 = vector.broadcast %cst_36 : f32 to vector<8x1xf32>
    %105 = arith.select %84, %103, %104 : vector<8x1xi1>, vector<8x1xf32>
    %106 = arith.addf %66, %105 : vector<8x1xf32>
    %cst_37 = arith.constant dense<0.000000e+00> : vector<8x12xf32>
    %107 = tpu.matmul %82, %3, %cst_37 {dimension_numbers = #tpu.dot_dimension_numbers<[1], [0], [0], [1], [0, 0, 1, 1], [], []>} : vector<8x12xf32>, vector<12x12xf32>, vector<8x12xf32> -> vector<8x12xf32>
    %c3_i32 = arith.constant 3 : i32
    %108 = vector.broadcast %c3_i32 : i32 to vector<8x1xi32>
    %109 = arith.cmpi eq, %0, %108 : vector<8x1xi32>
    %110 = vector.broadcast %7 : vector<1x12xf32> to vector<8x12xf32>
    %111 = arith.mulf %110, %82 : vector<8x12xf32>
    %cst_38 = arith.constant dense<0.000000e+00> : vector<8xf32>
    %112 = vector.multi_reduction <add>, %111, %cst_38 [1] : vector<8x12xf32> to vector<8xf32>
    %113 = vector.shape_cast %112 : vector<8xf32> to vector<8x1xf32>
    %cst_39 = arith.constant 0.000000e+00 : f32
    %114 = vector.broadcast %cst_39 : f32 to vector<8x1xf32>
    %115 = arith.select %109, %113, %114 : vector<8x1xi1>, vector<8x1xf32>
    %116 = arith.addf %76, %115 : vector<8x1xf32>
    %117 = vector.extract_strided_slice %13 {offsets = [24, 0], sizes = [8, 12], strides = [1, 1]} : vector<64x12xf32> to vector<8x12xf32>
    %118 = vector.extract_strided_slice %1 {offsets = [0, 3], sizes = [8, 1], strides = [1, 1]} : vector<8x8xi32> to vector<8x1xi32>
    %119 = vector.broadcast %118 : vector<8x1xi32> to vector<8x12xi32>
    %120 = arith.cmpi eq, %14, %119 : vector<8x12xi32>
    %121 = arith.extui %120 : vector<8x12xi1> to vector<8x12xi32>
    %122 = arith.sitofp %121 : vector<8x12xi32> to vector<8x12xf32>
    %c3_i32_40 = arith.constant 3 : i32
    %123 = vector.broadcast %c3_i32_40 : i32 to vector<8x1xi32>
    %124 = arith.cmpi sgt, %0, %123 : vector<8x1xi32>
    %cst_41 = arith.constant dense<0xFF800000> : vector<8xf32>
    %125 = vector.multi_reduction <maximumf>, %99, %cst_41 [1] : vector<8x12xf32> to vector<8xf32>
    %126 = vector.shape_cast %125 : vector<8xf32> to vector<8x1xf32>
    %127 = vector.broadcast %126 : vector<8x1xf32> to vector<8x12xf32>
    %128 = arith.subf %99, %127 : vector<8x12xf32>
    %129 = math.exp %128 : vector<8x12xf32>
    %cst_42 = arith.constant dense<0.000000e+00> : vector<8x12xf32>
    %130 = tpu.matmul %129, %4, %cst_42 {dimension_numbers = #tpu.dot_dimension_numbers<[1], [0], [0], [1], [0, 0, 1, 1], [], []>} : vector<8x12xf32>, vector<12x12xf32>, vector<8x12xf32> -> vector<8x12xf32>
    %131 = vector.broadcast %126 : vector<8x1xf32> to vector<8x12xf32>
    %132 = vector.broadcast %5 : vector<1x12xf32> to vector<8x12xf32>
    %133 = arith.addf %131, %132 : vector<8x12xf32>
    %134 = math.log %130 : vector<8x12xf32>
    %135 = arith.addf %133, %134 : vector<8x12xf32>
    %136 = arith.addf %135, %117 : vector<8x12xf32>
    %137 = vector.shape_cast %124 : vector<8x1xi1> to vector<8x1xi1>
    %138 = vector.broadcast %137 : vector<8x1xi1> to vector<8x12xi1>
    %139 = arith.select %138, %136, %99 : vector<8x12xi1>, vector<8x12xf32>
    %140 = arith.addf %117, %107 : vector<8x12xf32>
    %141 = arith.mulf %140, %122 : vector<8x12xf32>
    %cst_43 = arith.constant dense<0.000000e+00> : vector<8xf32>
    %142 = vector.multi_reduction <add>, %141, %cst_43 [1] : vector<8x12xf32> to vector<8xf32>
    %143 = vector.shape_cast %142 : vector<8xf32> to vector<8x1xf32>
    %cst_44 = arith.constant 0.000000e+00 : f32
    %144 = vector.broadcast %cst_44 : f32 to vector<8x1xf32>
    %145 = arith.select %124, %143, %144 : vector<8x1xi1>, vector<8x1xf32>
    %146 = arith.addf %106, %145 : vector<8x1xf32>
    %cst_45 = arith.constant dense<0.000000e+00> : vector<8x12xf32>
    %147 = tpu.matmul %122, %3, %cst_45 {dimension_numbers = #tpu.dot_dimension_numbers<[1], [0], [0], [1], [0, 0, 1, 1], [], []>} : vector<8x12xf32>, vector<12x12xf32>, vector<8x12xf32> -> vector<8x12xf32>
    %c4_i32 = arith.constant 4 : i32
    %148 = vector.broadcast %c4_i32 : i32 to vector<8x1xi32>
    %149 = arith.cmpi eq, %0, %148 : vector<8x1xi32>
    %150 = vector.broadcast %7 : vector<1x12xf32> to vector<8x12xf32>
    %151 = arith.mulf %150, %122 : vector<8x12xf32>
    %cst_46 = arith.constant dense<0.000000e+00> : vector<8xf32>
    %152 = vector.multi_reduction <add>, %151, %cst_46 [1] : vector<8x12xf32> to vector<8xf32>
    %153 = vector.shape_cast %152 : vector<8xf32> to vector<8x1xf32>
    %cst_47 = arith.constant 0.000000e+00 : f32
    %154 = vector.broadcast %cst_47 : f32 to vector<8x1xf32>
    %155 = arith.select %149, %153, %154 : vector<8x1xi1>, vector<8x1xf32>
    %156 = arith.addf %116, %155 : vector<8x1xf32>
    %157 = vector.extract_strided_slice %13 {offsets = [32, 0], sizes = [8, 12], strides = [1, 1]} : vector<64x12xf32> to vector<8x12xf32>
    %158 = vector.extract_strided_slice %1 {offsets = [0, 4], sizes = [8, 1], strides = [1, 1]} : vector<8x8xi32> to vector<8x1xi32>
    %159 = vector.broadcast %158 : vector<8x1xi32> to vector<8x12xi32>
    %160 = arith.cmpi eq, %14, %159 : vector<8x12xi32>
    %161 = arith.extui %160 : vector<8x12xi1> to vector<8x12xi32>
    %162 = arith.sitofp %161 : vector<8x12xi32> to vector<8x12xf32>
    %c4_i32_48 = arith.constant 4 : i32
    %163 = vector.broadcast %c4_i32_48 : i32 to vector<8x1xi32>
    %164 = arith.cmpi sgt, %0, %163 : vector<8x1xi32>
    %cst_49 = arith.constant dense<0xFF800000> : vector<8xf32>
    %165 = vector.multi_reduction <maximumf>, %139, %cst_49 [1] : vector<8x12xf32> to vector<8xf32>
    %166 = vector.shape_cast %165 : vector<8xf32> to vector<8x1xf32>
    %167 = vector.broadcast %166 : vector<8x1xf32> to vector<8x12xf32>
    %168 = arith.subf %139, %167 : vector<8x12xf32>
    %169 = math.exp %168 : vector<8x12xf32>
    %cst_50 = arith.constant dense<0.000000e+00> : vector<8x12xf32>
    %170 = tpu.matmul %169, %4, %cst_50 {dimension_numbers = #tpu.dot_dimension_numbers<[1], [0], [0], [1], [0, 0, 1, 1], [], []>} : vector<8x12xf32>, vector<12x12xf32>, vector<8x12xf32> -> vector<8x12xf32>
    %171 = vector.broadcast %166 : vector<8x1xf32> to vector<8x12xf32>
    %172 = vector.broadcast %5 : vector<1x12xf32> to vector<8x12xf32>
    %173 = arith.addf %171, %172 : vector<8x12xf32>
    %174 = math.log %170 : vector<8x12xf32>
    %175 = arith.addf %173, %174 : vector<8x12xf32>
    %176 = arith.addf %175, %157 : vector<8x12xf32>
    %177 = vector.shape_cast %164 : vector<8x1xi1> to vector<8x1xi1>
    %178 = vector.broadcast %177 : vector<8x1xi1> to vector<8x12xi1>
    %179 = arith.select %178, %176, %139 : vector<8x12xi1>, vector<8x12xf32>
    %180 = arith.addf %157, %147 : vector<8x12xf32>
    %181 = arith.mulf %180, %162 : vector<8x12xf32>
    %cst_51 = arith.constant dense<0.000000e+00> : vector<8xf32>
    %182 = vector.multi_reduction <add>, %181, %cst_51 [1] : vector<8x12xf32> to vector<8xf32>
    %183 = vector.shape_cast %182 : vector<8xf32> to vector<8x1xf32>
    %cst_52 = arith.constant 0.000000e+00 : f32
    %184 = vector.broadcast %cst_52 : f32 to vector<8x1xf32>
    %185 = arith.select %164, %183, %184 : vector<8x1xi1>, vector<8x1xf32>
    %186 = arith.addf %146, %185 : vector<8x1xf32>
    %cst_53 = arith.constant dense<0.000000e+00> : vector<8x12xf32>
    %187 = tpu.matmul %162, %3, %cst_53 {dimension_numbers = #tpu.dot_dimension_numbers<[1], [0], [0], [1], [0, 0, 1, 1], [], []>} : vector<8x12xf32>, vector<12x12xf32>, vector<8x12xf32> -> vector<8x12xf32>
    %c5_i32 = arith.constant 5 : i32
    %188 = vector.broadcast %c5_i32 : i32 to vector<8x1xi32>
    %189 = arith.cmpi eq, %0, %188 : vector<8x1xi32>
    %190 = vector.broadcast %7 : vector<1x12xf32> to vector<8x12xf32>
    %191 = arith.mulf %190, %162 : vector<8x12xf32>
    %cst_54 = arith.constant dense<0.000000e+00> : vector<8xf32>
    %192 = vector.multi_reduction <add>, %191, %cst_54 [1] : vector<8x12xf32> to vector<8xf32>
    %193 = vector.shape_cast %192 : vector<8xf32> to vector<8x1xf32>
    %cst_55 = arith.constant 0.000000e+00 : f32
    %194 = vector.broadcast %cst_55 : f32 to vector<8x1xf32>
    %195 = arith.select %189, %193, %194 : vector<8x1xi1>, vector<8x1xf32>
    %196 = arith.addf %156, %195 : vector<8x1xf32>
    %197 = vector.extract_strided_slice %13 {offsets = [40, 0], sizes = [8, 12], strides = [1, 1]} : vector<64x12xf32> to vector<8x12xf32>
    %198 = vector.extract_strided_slice %1 {offsets = [0, 5], sizes = [8, 1], strides = [1, 1]} : vector<8x8xi32> to vector<8x1xi32>
    %199 = vector.broadcast %198 : vector<8x1xi32> to vector<8x12xi32>
    %200 = arith.cmpi eq, %14, %199 : vector<8x12xi32>
    %201 = arith.extui %200 : vector<8x12xi1> to vector<8x12xi32>
    %202 = arith.sitofp %201 : vector<8x12xi32> to vector<8x12xf32>
    %c5_i32_56 = arith.constant 5 : i32
    %203 = vector.broadcast %c5_i32_56 : i32 to vector<8x1xi32>
    %204 = arith.cmpi sgt, %0, %203 : vector<8x1xi32>
    %cst_57 = arith.constant dense<0xFF800000> : vector<8xf32>
    %205 = vector.multi_reduction <maximumf>, %179, %cst_57 [1] : vector<8x12xf32> to vector<8xf32>
    %206 = vector.shape_cast %205 : vector<8xf32> to vector<8x1xf32>
    %207 = vector.broadcast %206 : vector<8x1xf32> to vector<8x12xf32>
    %208 = arith.subf %179, %207 : vector<8x12xf32>
    %209 = math.exp %208 : vector<8x12xf32>
    %cst_58 = arith.constant dense<0.000000e+00> : vector<8x12xf32>
    %210 = tpu.matmul %209, %4, %cst_58 {dimension_numbers = #tpu.dot_dimension_numbers<[1], [0], [0], [1], [0, 0, 1, 1], [], []>} : vector<8x12xf32>, vector<12x12xf32>, vector<8x12xf32> -> vector<8x12xf32>
    %211 = vector.broadcast %206 : vector<8x1xf32> to vector<8x12xf32>
    %212 = vector.broadcast %5 : vector<1x12xf32> to vector<8x12xf32>
    %213 = arith.addf %211, %212 : vector<8x12xf32>
    %214 = math.log %210 : vector<8x12xf32>
    %215 = arith.addf %213, %214 : vector<8x12xf32>
    %216 = arith.addf %215, %197 : vector<8x12xf32>
    %217 = vector.shape_cast %204 : vector<8x1xi1> to vector<8x1xi1>
    %218 = vector.broadcast %217 : vector<8x1xi1> to vector<8x12xi1>
    %219 = arith.select %218, %216, %179 : vector<8x12xi1>, vector<8x12xf32>
    %220 = arith.addf %197, %187 : vector<8x12xf32>
    %221 = arith.mulf %220, %202 : vector<8x12xf32>
    %cst_59 = arith.constant dense<0.000000e+00> : vector<8xf32>
    %222 = vector.multi_reduction <add>, %221, %cst_59 [1] : vector<8x12xf32> to vector<8xf32>
    %223 = vector.shape_cast %222 : vector<8xf32> to vector<8x1xf32>
    %cst_60 = arith.constant 0.000000e+00 : f32
    %224 = vector.broadcast %cst_60 : f32 to vector<8x1xf32>
    %225 = arith.select %204, %223, %224 : vector<8x1xi1>, vector<8x1xf32>
    %226 = arith.addf %186, %225 : vector<8x1xf32>
    %cst_61 = arith.constant dense<0.000000e+00> : vector<8x12xf32>
    %227 = tpu.matmul %202, %3, %cst_61 {dimension_numbers = #tpu.dot_dimension_numbers<[1], [0], [0], [1], [0, 0, 1, 1], [], []>} : vector<8x12xf32>, vector<12x12xf32>, vector<8x12xf32> -> vector<8x12xf32>
    %c6_i32 = arith.constant 6 : i32
    %228 = vector.broadcast %c6_i32 : i32 to vector<8x1xi32>
    %229 = arith.cmpi eq, %0, %228 : vector<8x1xi32>
    %230 = vector.broadcast %7 : vector<1x12xf32> to vector<8x12xf32>
    %231 = arith.mulf %230, %202 : vector<8x12xf32>
    %cst_62 = arith.constant dense<0.000000e+00> : vector<8xf32>
    %232 = vector.multi_reduction <add>, %231, %cst_62 [1] : vector<8x12xf32> to vector<8xf32>
    %233 = vector.shape_cast %232 : vector<8xf32> to vector<8x1xf32>
    %cst_63 = arith.constant 0.000000e+00 : f32
    %234 = vector.broadcast %cst_63 : f32 to vector<8x1xf32>
    %235 = arith.select %229, %233, %234 : vector<8x1xi1>, vector<8x1xf32>
    %236 = arith.addf %196, %235 : vector<8x1xf32>
    %237 = vector.extract_strided_slice %13 {offsets = [48, 0], sizes = [8, 12], strides = [1, 1]} : vector<64x12xf32> to vector<8x12xf32>
    %238 = vector.extract_strided_slice %1 {offsets = [0, 6], sizes = [8, 1], strides = [1, 1]} : vector<8x8xi32> to vector<8x1xi32>
    %239 = vector.broadcast %238 : vector<8x1xi32> to vector<8x12xi32>
    %240 = arith.cmpi eq, %14, %239 : vector<8x12xi32>
    %241 = arith.extui %240 : vector<8x12xi1> to vector<8x12xi32>
    %242 = arith.sitofp %241 : vector<8x12xi32> to vector<8x12xf32>
    %c6_i32_64 = arith.constant 6 : i32
    %243 = vector.broadcast %c6_i32_64 : i32 to vector<8x1xi32>
    %244 = arith.cmpi sgt, %0, %243 : vector<8x1xi32>
    %cst_65 = arith.constant dense<0xFF800000> : vector<8xf32>
    %245 = vector.multi_reduction <maximumf>, %219, %cst_65 [1] : vector<8x12xf32> to vector<8xf32>
    %246 = vector.shape_cast %245 : vector<8xf32> to vector<8x1xf32>
    %247 = vector.broadcast %246 : vector<8x1xf32> to vector<8x12xf32>
    %248 = arith.subf %219, %247 : vector<8x12xf32>
    %249 = math.exp %248 : vector<8x12xf32>
    %cst_66 = arith.constant dense<0.000000e+00> : vector<8x12xf32>
    %250 = tpu.matmul %249, %4, %cst_66 {dimension_numbers = #tpu.dot_dimension_numbers<[1], [0], [0], [1], [0, 0, 1, 1], [], []>} : vector<8x12xf32>, vector<12x12xf32>, vector<8x12xf32> -> vector<8x12xf32>
    %251 = vector.broadcast %246 : vector<8x1xf32> to vector<8x12xf32>
    %252 = vector.broadcast %5 : vector<1x12xf32> to vector<8x12xf32>
    %253 = arith.addf %251, %252 : vector<8x12xf32>
    %254 = math.log %250 : vector<8x12xf32>
    %255 = arith.addf %253, %254 : vector<8x12xf32>
    %256 = arith.addf %255, %237 : vector<8x12xf32>
    %257 = vector.shape_cast %244 : vector<8x1xi1> to vector<8x1xi1>
    %258 = vector.broadcast %257 : vector<8x1xi1> to vector<8x12xi1>
    %259 = arith.select %258, %256, %219 : vector<8x12xi1>, vector<8x12xf32>
    %260 = arith.addf %237, %227 : vector<8x12xf32>
    %261 = arith.mulf %260, %242 : vector<8x12xf32>
    %cst_67 = arith.constant dense<0.000000e+00> : vector<8xf32>
    %262 = vector.multi_reduction <add>, %261, %cst_67 [1] : vector<8x12xf32> to vector<8xf32>
    %263 = vector.shape_cast %262 : vector<8xf32> to vector<8x1xf32>
    %cst_68 = arith.constant 0.000000e+00 : f32
    %264 = vector.broadcast %cst_68 : f32 to vector<8x1xf32>
    %265 = arith.select %244, %263, %264 : vector<8x1xi1>, vector<8x1xf32>
    %266 = arith.addf %226, %265 : vector<8x1xf32>
    %cst_69 = arith.constant dense<0.000000e+00> : vector<8x12xf32>
    %267 = tpu.matmul %242, %3, %cst_69 {dimension_numbers = #tpu.dot_dimension_numbers<[1], [0], [0], [1], [0, 0, 1, 1], [], []>} : vector<8x12xf32>, vector<12x12xf32>, vector<8x12xf32> -> vector<8x12xf32>
    %c7_i32 = arith.constant 7 : i32
    %268 = vector.broadcast %c7_i32 : i32 to vector<8x1xi32>
    %269 = arith.cmpi eq, %0, %268 : vector<8x1xi32>
    %270 = vector.broadcast %7 : vector<1x12xf32> to vector<8x12xf32>
    %271 = arith.mulf %270, %242 : vector<8x12xf32>
    %cst_70 = arith.constant dense<0.000000e+00> : vector<8xf32>
    %272 = vector.multi_reduction <add>, %271, %cst_70 [1] : vector<8x12xf32> to vector<8xf32>
    %273 = vector.shape_cast %272 : vector<8xf32> to vector<8x1xf32>
    %cst_71 = arith.constant 0.000000e+00 : f32
    %274 = vector.broadcast %cst_71 : f32 to vector<8x1xf32>
    %275 = arith.select %269, %273, %274 : vector<8x1xi1>, vector<8x1xf32>
    %276 = arith.addf %236, %275 : vector<8x1xf32>
    %277 = vector.extract_strided_slice %13 {offsets = [56, 0], sizes = [8, 12], strides = [1, 1]} : vector<64x12xf32> to vector<8x12xf32>
    %278 = vector.extract_strided_slice %1 {offsets = [0, 7], sizes = [8, 1], strides = [1, 1]} : vector<8x8xi32> to vector<8x1xi32>
    %279 = vector.broadcast %278 : vector<8x1xi32> to vector<8x12xi32>
    %280 = arith.cmpi eq, %14, %279 : vector<8x12xi32>
    %281 = arith.extui %280 : vector<8x12xi1> to vector<8x12xi32>
    %282 = arith.sitofp %281 : vector<8x12xi32> to vector<8x12xf32>
    %c7_i32_72 = arith.constant 7 : i32
    %283 = vector.broadcast %c7_i32_72 : i32 to vector<8x1xi32>
    %284 = arith.cmpi sgt, %0, %283 : vector<8x1xi32>
    %cst_73 = arith.constant dense<0xFF800000> : vector<8xf32>
    %285 = vector.multi_reduction <maximumf>, %259, %cst_73 [1] : vector<8x12xf32> to vector<8xf32>
    %286 = vector.shape_cast %285 : vector<8xf32> to vector<8x1xf32>
    %287 = vector.broadcast %286 : vector<8x1xf32> to vector<8x12xf32>
    %288 = arith.subf %259, %287 : vector<8x12xf32>
    %289 = math.exp %288 : vector<8x12xf32>
    %cst_74 = arith.constant dense<0.000000e+00> : vector<8x12xf32>
    %290 = tpu.matmul %289, %4, %cst_74 {dimension_numbers = #tpu.dot_dimension_numbers<[1], [0], [0], [1], [0, 0, 1, 1], [], []>} : vector<8x12xf32>, vector<12x12xf32>, vector<8x12xf32> -> vector<8x12xf32>
    %291 = vector.broadcast %286 : vector<8x1xf32> to vector<8x12xf32>
    %292 = vector.broadcast %5 : vector<1x12xf32> to vector<8x12xf32>
    %293 = arith.addf %291, %292 : vector<8x12xf32>
    %294 = math.log %290 : vector<8x12xf32>
    %295 = arith.addf %293, %294 : vector<8x12xf32>
    %296 = arith.addf %295, %277 : vector<8x12xf32>
    %297 = vector.shape_cast %284 : vector<8x1xi1> to vector<8x1xi1>
    %298 = vector.broadcast %297 : vector<8x1xi1> to vector<8x12xi1>
    %299 = arith.select %298, %296, %259 : vector<8x12xi1>, vector<8x12xf32>
    %300 = arith.addf %277, %267 : vector<8x12xf32>
    %301 = arith.mulf %300, %282 : vector<8x12xf32>
    %cst_75 = arith.constant dense<0.000000e+00> : vector<8xf32>
    %302 = vector.multi_reduction <add>, %301, %cst_75 [1] : vector<8x12xf32> to vector<8xf32>
    %303 = vector.shape_cast %302 : vector<8xf32> to vector<8x1xf32>
    %cst_76 = arith.constant 0.000000e+00 : f32
    %304 = vector.broadcast %cst_76 : f32 to vector<8x1xf32>
    %305 = arith.select %284, %303, %304 : vector<8x1xi1>, vector<8x1xf32>
    %306 = arith.addf %266, %305 : vector<8x1xf32>
    %c8_i32 = arith.constant 8 : i32
    %307 = vector.broadcast %c8_i32 : i32 to vector<8x1xi32>
    %308 = arith.cmpi eq, %0, %307 : vector<8x1xi32>
    %309 = vector.broadcast %7 : vector<1x12xf32> to vector<8x12xf32>
    %310 = arith.mulf %309, %282 : vector<8x12xf32>
    %cst_77 = arith.constant dense<0.000000e+00> : vector<8xf32>
    %311 = vector.multi_reduction <add>, %310, %cst_77 [1] : vector<8x12xf32> to vector<8xf32>
    %312 = vector.shape_cast %311 : vector<8xf32> to vector<8x1xf32>
    %cst_78 = arith.constant 0.000000e+00 : f32
    %313 = vector.broadcast %cst_78 : f32 to vector<8x1xf32>
    %314 = arith.select %308, %312, %313 : vector<8x1xi1>, vector<8x1xf32>
    %315 = arith.addf %276, %314 : vector<8x1xf32>
    %316 = vector.broadcast %7 : vector<1x12xf32> to vector<8x12xf32>
    %317 = arith.addf %299, %316 : vector<8x12xf32>
    %cst_79 = arith.constant dense<0xFF800000> : vector<8xf32>
    %318 = vector.multi_reduction <maximumf>, %317, %cst_79 [1] : vector<8x12xf32> to vector<8xf32>
    %319 = vector.shape_cast %318 : vector<8xf32> to vector<8x1xf32>
    %320 = vector.broadcast %319 : vector<8x1xf32> to vector<8x12xf32>
    %321 = arith.subf %317, %320 : vector<8x12xf32>
    %322 = math.exp %321 : vector<8x12xf32>
    %cst_80 = arith.constant dense<0.000000e+00> : vector<8xf32>
    %323 = vector.multi_reduction <add>, %322, %cst_80 [1] : vector<8x12xf32> to vector<8xf32>
    %324 = vector.shape_cast %323 : vector<8xf32> to vector<8x1xf32>
    %325 = math.log %324 : vector<8x1xf32>
    %326 = arith.addf %319, %325 : vector<8x1xf32>
    %327 = arith.addf %306, %315 : vector<8x1xf32>
    %328 = tpu.iota {dimensions = array<i32: 1>} : vector<8x2xi32>
    %c0_i32 = arith.constant 0 : i32
    %329 = vector.broadcast %c0_i32 : i32 to vector<8x2xi32>
    %330 = arith.cmpi eq, %328, %329 : vector<8x2xi32>
    %331 = vector.shape_cast %326 : vector<8x1xf32> to vector<8x1xf32>
    %332 = vector.broadcast %331 : vector<8x1xf32> to vector<8x2xf32>
    %333 = vector.shape_cast %327 : vector<8x1xf32> to vector<8x1xf32>
    %334 = vector.broadcast %333 : vector<8x1xf32> to vector<8x2xf32>
    %335 = arith.select %330, %332, %334 : vector<8x2xi1>, vector<8x2xf32>
    %c0_81 = arith.constant 0 : index
    %c0_82 = arith.constant 0 : index
    %336 = vector.load %arg11[%c0_81, %c0_82] : memref<8x2xf32, #tpu.memory_space<vmem>>, vector<8x2xf32>
    tpu.vector_store %arg11[%c0_81, %c0_82], %335 {strides = array<i32>} : memref<8x2xf32, #tpu.memory_space<vmem>>, vector<8x2xf32>,
    return
  }
  func.func @transform_0(%arg0: i32) -> (i32, i32) {
    %c0_i32 = arith.constant 0 : i32
    %c0_i32_0 = arith.constant 0 : i32
    return %arg0, %c0_i32 : i32, i32
  }
  func.func @transform_1(%arg0: i32) -> (i32, i32) {
    %c0_i32 = arith.constant 0 : i32
    %c0_i32_0 = arith.constant 0 : i32
    return %arg0, %c0_i32 : i32, i32
  }
  func.func @transform_2(%arg0: i32) -> (i32, i32, i32) {
    %c0_i32 = arith.constant 0 : i32
    %c0_i32_0 = arith.constant 0 : i32
    %c0_i32_1 = arith.constant 0 : i32
    return %arg0, %c0_i32, %c0_i32_0 : i32, i32, i32
  }
  func.func @transform_3(%arg0: i32) -> (i32, i32) {
    %c0_i32 = arith.constant 0 : i32
    %c0_i32_0 = arith.constant 0 : i32
    %c0_i32_1 = arith.constant 0 : i32
    return %c0_i32, %c0_i32_0 : i32, i32
  }
  func.func @transform_4(%arg0: i32) -> (i32, i32) {
    %c0_i32 = arith.constant 0 : i32
    %c0_i32_0 = arith.constant 0 : i32
    %c0_i32_1 = arith.constant 0 : i32
    return %c0_i32, %c0_i32_0 : i32, i32
  }
  func.func @transform_5(%arg0: i32) -> (i32, i32) {
    %c0_i32 = arith.constant 0 : i32
    %c0_i32_0 = arith.constant 0 : i32
    %c0_i32_1 = arith.constant 0 : i32
    return %c0_i32, %c0_i32_0 : i32, i32
  }
  func.func @transform_6(%arg0: i32) -> (i32, i32) {
    %c0_i32 = arith.constant 0 : i32
    %c0_i32_0 = arith.constant 0 : i32
    %c0_i32_1 = arith.constant 0 : i32
    return %c0_i32, %c0_i32_0 : i32, i32
  }
  func.func @transform_7(%arg0: i32) -> (i32, i32) {
    %c0_i32 = arith.constant 0 : i32
    %c0_i32_0 = arith.constant 0 : i32
    %c0_i32_1 = arith.constant 0 : i32
    return %c0_i32, %c0_i32_0 : i32, i32
  }
  func.func @transform_8(%arg0: i32) -> (i32, i32) {
    %c0_i32 = arith.constant 0 : i32
    %c0_i32_0 = arith.constant 0 : i32
    %c0_i32_1 = arith.constant 0 : i32
    return %c0_i32, %c0_i32_0 : i32, i32
  }
  func.func @transform_9(%arg0: i32) -> (i32, i32) {
    %c0_i32 = arith.constant 0 : i32
    %c0_i32_0 = arith.constant 0 : i32
    %c0_i32_1 = arith.constant 0 : i32
    return %c0_i32, %c0_i32_0 : i32, i32
  }
  func.func @transform_10(%arg0: i32) -> (i32, i32) {
    %c0_i32 = arith.constant 0 : i32
    %c0_i32_0 = arith.constant 0 : i32
    return %arg0, %c0_i32 : i32, i32
  }
}

</mosaic_0001>

<bundles_post_ra>
// kernel: tpu_custom_call.1
= control target key start
LH: loop header
LB: loop body
LE: loop exit
PB: predicated region body
PF: predicated region fallthrough
CT: control target
= control target key end

     0   :  { %vm96_vm0 = vcmask 261120   ;;  %v1860_v4 = vmov 0   ;;  %vm190_vm1 = vcmask 97280   ;;  %vm209_vm2 = vcmask 1043456   ;;  %s2299_s3 = inlined_call_operand.vmem [shape: bf16[32,12], index: 3, kind: input, shape index: {}]   ;;  %s2300_s2 = inlined_call_operand.vmem [shape: bf16[1,64,32], index: 2, kind: input, shape index: {}]   ;;  %s2301_s4 = inlined_call_operand.vmem [shape: f32[1,12], index: 4, kind: input, shape index: {}]   ;;  %s2302_s8 = inlined_call_operand.vmem [shape: f32[1,12], index: 8, kind: input, shape index: {}]   ;;  %s2303_s0 = inlined_call_operand.vmem [shape: s32[8,1], index: 0, kind: input, shape index: {}]   ;;  %s2304_s1 = inlined_call_operand.vmem [shape: s32[8,8], index: 1, kind: input, shape index: {}]   ;;  %s2305_s5 = inlined_call_operand.vmem [shape: f32[12,12], index: 5, kind: input, shape index: {}]   ;;  %s2306_s6 = inlined_call_operand.vmem [shape: f32[12,12], index: 6, kind: input, shape index: {}]   ;;  %s2307_s7 = inlined_call_operand.vmem [shape: f32[1,12], index: 7, kind: input, shape index: {}]   ;;  %s2308_s9 = inlined_call_operand.vmem [shape: f32[1,12], index: 9, kind: input, shape index: {}]   ;;  %s2309_s10 = inlined_call_operand.vmem [shape: f32[8,2], index: 10, kind: output, shape index: {}]  }
   0x1   :  { %v1822_v0 = vld [vmem:[%s2299_s3] sm:$0xff]   ;;  %v1823_v1 = vld [vmem:[%s2299_s3 + $0x8] sm:$0xff]   ;;  %1810 = vset.pattern.permute.xlu0 %v1860_v4  ;;  %1811 = vset.pattern.permute.xlu1 %v1860_v4  ;;  %v1861_v18 = vmov 0.0|0.0   ;;  %vm1862_vm3 = vmmov 1   ;;  %vm1863_vm6 = vmmov 0   ;;  %v1864_v22 = vmov 0.0  }
   0x2   :  { %1632 = vmatprep.subr.bf16.mxu0 %v1822_v0  ;;  %v1824_v2 = vld [vmem:[%s2300_s2] sm:$0xff]   ;;  %v1825_v3 = vld [vmem:[%s2300_s2 + $0x8] sm:$0xff]   ;;  %1742 = vmatprep.subr.bf16.mxu1 %v1861_v18  ;;  %vm1979_vm4 = vmpackc.low %vm209_vm2, %vm1862_vm3  ;;  %v174_v29 = vlaneseq  ;;  %v1865_v35 = vmov 1  }
   0x3   :  { %1633 = vmatpush3.bf16.msra.mxu0 %v1822_v0  ;;  %1636 = vmatprep.mubr.msk.bf16.mxu0 %vm96_vm0, %v1824_v2  ;;  %v1946_v5 = vld [vmem:[%s2301_s4] ss:$0 sm:$0xff]  ;;  %v40_v16 = vld [vmem:[%s2305_s5 + $0x8] sm:$0xf] }
   0x4   :  { %1634 = vmatprep.subr.bf16.mxu0 %v1823_v1  ;;  %v1546_v7 = vld [vmem:[%s2302_s8] ss:$0 sm:$0xff]  ;;  %1648 = vmatprep.mubr.msk.f32.mxu1 %vm1863_vm6, %v1864_v22  ;;  %v42_v24 = vld [vmem:[%s2306_s6 + $0x8] sm:$0xf]  ;;  %v2012_v31 = vand.u32 127, %v174_v29 }
   0x5   :  { %v1963_v14 = vld [vmem:[%s2303_s0] sm:$0xff] }
   0x6   :  { %v39_v15 = vld [vmem:[%s2305_s5] sm:$0xff]  ;;  %vm482_vm5 = vcmp.gt.s32.totalorder %v1963_v14, 2  ;;  %vm289_vm7 = vcmp.gt.s32.totalorder %v1963_v14, 1  ;;  %vm850_vm12 = vcmp.gt.s32.totalorder %v1963_v14, 4  ;;  %vm666_vm13 = vcmp.gt.s32.totalorder %v1963_v14, 3 }
   0x7   :  { %1635 = vmatpush3.bf16.msra.mxu0 %v1823_v1  ;;  %v1974_v17 = vld [vmem:[%s2304_s1] sm:$0xff]  ;;  %v1977_v19 = vpack.c.bf16 %v40_v16, %v39_v15  ;;  %v567_v21 = vsel %vm482_vm5, 1, %v1860_v4  ;;  %v383_v26 = vsel %vm289_vm7, 1, %v1860_v4  ;;  %v935_v15 = vsel %vm850_vm12, 1, %v1860_v4 }
   0x8   :  { %1762 = vmatprep.subr.bf16.mxu0 %v1861_v18  ;;  %v41_v23 = vld [vmem:[%s2306_s6] sm:$0xff]  ;;  %385 = vperm.xlu1 %1811, %v383_v26   ;;  %v751_v16 = vsel %vm666_vm13, 1, %v1860_v4  ;;  %vm1218_vm2 = vcmp.gt.s32.totalorder %v1963_v14, 6 }
   0x9   :  { %1745 = vmatpush3.bf16.msk.msra.mxu1 %vm1979_vm4, %v1977_v19  ;;  %v2001_v25 = vpack.c.bf16 %v42_v24, %v41_v23  ;;  %v2037_v42 = vld [vmem:[%s2307_s7] ss:$0 sm:$0xff] }
   0xa   :  { %1637 = vmatmul.mubr.msk.bf16.vlgmr.msra.gmra.mrb[0].mxu0 %vm96_vm0, %v1825_v3  ;;  %1746 = vmatprep.subr.bf16.mxu1 %v1861_v18 }
   0xb   :  { %1765 = vmatpush3.bf16.msk.msra.mxu0 %vm1979_vm4, %v2001_v25 }
   0xc   :  { %1770 = vmatprep.subr.bf16.mxu0 %v1861_v18  ;;  %1812 = vset.pattern.permute.xlu1 %v1865_v35 }
  0x87   :  { %v386_v46 = vpop.permute.xlu1 %385 }
  0x88   :  { %vm387_vm9 = vcmp.eq.s32.totalorder %v386_v46, 1 }
  0xdd   :  { %v1948_v6 = vpop.f32.mrb[0].mxu0 }
  0xde   :  { %v143_v8 = vpop.f32.mrb[1].mxu0  ;;  %v152_v58 = vadd.f32 %v1948_v6, %v1946_v5  ;;  %v1826_v6 = vld [vmem:[%s2300_s2 + $0x10] sm:$0xff]  }
  0xdf   :  { %v144_v9 = vadd.f32 %v1946_v5, %v143_v8  ;;  %v1954_v10 = vpop.f32.mrb[2].mxu0  ;;  %1640 = vmatprep.mubr.msk.bf16.mxu0 %vm96_vm0, %v1826_v6 }
  0xe0   :  { %v146_v11 = vpop.f32.mrb[3].mxu0 }
  0xe1   :  { %v1956_v12 = vadd.f32 %v1546_v7, %v144_v9  ;;  %v147_v36 = vadd.f32 %v1946_v5, %v146_v11 }
  0xe3   :  { %v290_v13 = vsel %vm190_vm1, %v1956_v12, -inf }
  0xe4   :  { %291 = vmax.xlane.f32.xlu0 %v290_v13  ;;  %v1827_v13 = vld [vmem:[%s2300_s2 + $0x18] sm:$0xff]  }
  0xe5   :  { %1641 = vmatmul.mubr.msk.bf16.gmra.mrb[4].mxu0 %vm96_vm0, %v1827_v13  ;;  %vm1034_vm0 = vcmp.gt.s32.totalorder %v1963_v14, 5 }
  0xe6   :  { %1683 = vmatprep.mubr.msk.f32.mxu0 %vm1863_vm6, %v1864_v22 }
  0xfa   :  { %177 = vperm.xlu0 %1810, %v1974_v17  }
  0xfe   :  { %569 = vperm.xlu0 %1810, %v567_v21  }
 0x171   :  { %v292_v27 = vpop.xlane.xlu0 %291 }
 0x172   :  { %v293_v28 = vsub.f32 %v1956_v12, %v292_v27  ;;  %v378_v44 = vadd.f32 %v2037_v42, %v292_v27 }
 0x174   :  { %v294_v30 = vmul.f32 1.442695, %v293_v28 }
 0x176   :  { %1828 = vpow2.f32 %v294_v30 }
 0x179   :  { %v178_v32 = vpop.permute.xlu0 %177 }
 0x17a   :  { %vm179_vm8 = vcmp.eq.s32.totalorder %v2012_v31, %v178_v32 }
 0x17b   :  { %v2016_v33 = vsel %vm179_vm8, 1.0, %v1864_v22 }
 0x17c   :  { %1649 = vmatmul.mubr.msk.f32.vlgmr.msra.gmra.mrb[0].mxu1 %vm190_vm1, %v2016_v33 }
 0x17d   :  { %1749 = vmatpush3.bf16.msk.msra.mxu1 %vm1979_vm4, %v2001_v25  ;;  %1655 = vmatprep.mubr.msk.f32.mxu1 %vm1863_vm6, %v1864_v22  ;;  %v570_v3 = vpop.permute.xlu0 %569 }
 0x17e   :  { %1750 = vmatprep.subr.bf16.mxu1 %v1861_v18  ;;  %vm571_vm11 = vcmp.eq.s32.totalorder %v570_v3, 1 }
 0x180   :  { %v1829_v34 = vpop.eup %1828 }
 0x181   :  { %1656 = vmatmul.mubr.msk.f32.vlgmr.msra.gmra.mrb[2].mxu1 %vm190_vm1, %v1829_v34 }
 0x182   :  { %1753 = vmatpush3.bf16.msk.msra.mxu1 %vm1979_vm4, %v1977_v19  ;;  %1662 = vmatprep.mubr.msk.f32.mxu1 %vm1863_vm6, %v1864_v22 }
 0x183   :  { %1754 = vmatprep.subr.bf16.mxu1 %v1861_v18 }
 0x1b8   :  { %v2097_v27 = vpop.f32.mrb[4].mxu0 }
 0x1b9   :  { %v159_v28 = vpop.f32.mrb[5].mxu0 }
 0x1ba   :  { %v2099_v29 = vpop.f32.mrb[6].mxu0 }
 0x1bb   :  { %v162_v30 = vpop.f32.mrb[7].mxu0 }
 0x24f   :  { %v279_v37 = vpop.f32.mrb[0].mxu1 }
 0x250   :  { %v389_v38 = vadd.f32 %v279_v37, %v147_v36  ;;  %v1650_v39 = vpop.f32.mrb[1].mxu1 }
 0x251   :  { %v2104_v39 = vadd.f32 %v1954_v10, %v1946_v5 }
 0x254   :  { %v368_v40 = vpop.f32.mrb[2].mxu1 }
 0x255   :  { %1830 = vlog2.f32 %v368_v40  ;;  %v1657_v41 = vpop.f32.mrb[3].mxu1 }
 0x25f   :  { %v1831_v43 = vpop.eup %1830 }
 0x260   :  { %v380_v45 = vmul.f32 0.6931472, %v1831_v43 }
 0x262   :  { %v381_v47 = vadd.f32 %v380_v45, %v378_v44 }
 0x264   :  { %v382_v48 = vadd.f32 %v381_v47, %v147_v36 }
 0x266   :  { %v388_v49 = vsel %vm387_vm9, %v382_v48, %v1956_v12 }
 0x267   :  { %v483_v50 = vsel %vm190_vm1, %v388_v49, -inf }
 0x268   :  { %484 = vmax.xlane.f32.xlu1 %v483_v50 }
 0x279   :  { %284 = vperm.xlu1 %1812, %v1974_v17  }
 0x27d   :  { %1813 = vset.pattern.permute.xlu1 %v1860_v4 }
 0x27e   :  { %753 = vperm.xlu1 %1813, %v751_v16  }
 0x2f5   :  { %v485_v51 = vpop.xlane.xlu1 %484 }
 0x2f6   :  { %v486_v52 = vsub.f32 %v388_v49, %v485_v51  ;;  %v562_v1 = vadd.f32 %v2037_v42, %v485_v51 }
 0x2f8   :  { %v487_v53 = vmul.f32 1.442695, %v486_v52 }
 0x2f9   :  { %v285_v54 = vpop.permute.xlu1 %284 }
 0x2fa   :  { %1832 = vpow2.f32 %v487_v53  ;;  %vm286_vm10 = vcmp.eq.s32.totalorder %v2012_v31, %v285_v54  ;;  %v2117_v54 = vadd.f32 %v1946_v5, %v159_v28  ;;  %v1867_v28 = vmov 6  }
 0x2fb   :  { %v2046_v55 = vsel %vm286_vm10, 1.0, %v1864_v22 }
 0x2fc   :  { %1663 = vmatmul.mubr.msk.f32.vlgmr.msra.gmra.mrb[4].mxu1 %vm190_vm1, %v2046_v55  ;;  %v2051_v56 = vmul.f32 %v2046_v55, %v389_v38 }
 0x2fd   :  { %1757 = vmatpush3.bf16.msk.msra.mxu1 %vm1979_vm4, %v2001_v25  ;;  %1669 = vmatprep.mubr.msk.f32.mxu1 %vm1863_vm6, %v1864_v22  ;;  %v754_v38 = vpop.permute.xlu1 %753 }
 0x2fe   :  { %1758 = vmatprep.subr.bf16.mxu1 %v1861_v18  ;;  %vm755_vm14 = vcmp.eq.s32.totalorder %v754_v38, 1 }
 0x304   :  { %v1833_v57 = vpop.eup %1832 }
 0x305   :  { %1670 = vmatmul.mubr.msk.f32.vlgmr.msra.gmra.mrb[6].mxu1 %vm190_vm1, %v1833_v57 }
 0x306   :  { %1761 = vmatpush3.bf16.msk.msra.mxu1 %vm1979_vm4, %v1977_v19  ;;  %1676 = vmatprep.mubr.msk.f32.mxu1 %vm1863_vm6, %v1864_v22 }
 0x307   :  { %1766 = vmatprep.subr.bf16.mxu1 %v1861_v18 }
 0x3cf   :  { %v465_v59 = vpop.f32.mrb[4].mxu1 }
 0x3d0   :  { %v2068_v60 = vadd.f32 %v465_v59, %v152_v58  ;;  %v1664_v61 = vpop.f32.mrb[5].mxu1 }
 0x3d8   :  { %v558_v62 = vpop.f32.mrb[6].mxu1 }
 0x3d9   :  { %1834 = vlog2.f32 %v558_v62  ;;  %v1671_v63 = vpop.f32.mrb[7].mxu1  ;;  %v1119_v62 = vsel %vm1034_vm0, 1, %v1860_v4 }
 0x3da   :  { %v1303_v63 = vsel %vm1218_vm2, 1, %v1860_v4 }
 0x3e3   :  { %v1835_v0 = vpop.eup %1834 }
 0x3e4   :  { %v564_v2 = vmul.f32 0.6931472, %v1835_v0 }
 0x3e6   :  { %v565_v7 = vadd.f32 %v564_v2, %v562_v1 }
 0x3e8   :  { %v566_v8 = vadd.f32 %v565_v7, %v152_v58  ;;  %v1866_v7 = vmov 2  }
 0x3ea   :  { %v572_v9 = vsel %vm571_vm11, %v566_v8, %v388_v49 }
 0x3eb   :  { %v667_v11 = vsel %vm190_vm1, %v572_v9, -inf }
 0x3ec   :  { %668 = vmax.xlane.f32.xlu0 %v667_v11 }
 0x402   :  { %937 = vperm.xlu0 %1810, %v935_v15   ;;  %v2138_v15 = vadd.f32 %v1946_v5, %v162_v30  ;;  %v2147_v30 = vld [vmem:[%s2308_s9] ss:$0 sm:$0xff] }
 0x406   :  { %1814 = vset.pattern.permute.xlu0 %v1866_v7 }
 0x479   :  { %v669_v21 = vpop.xlane.xlu0 %668 }
 0x47a   :  { %v670_v23 = vsub.f32 %v572_v9, %v669_v21  ;;  %v746_v36 = vadd.f32 %v2037_v42, %v669_v21 }
 0x47c   :  { %v671_v24 = vmul.f32 1.442695, %v670_v23 }
 0x47e   :  { %1836 = vpow2.f32 %v671_v24 }
 0x481   :  { %v938_v53 = vpop.permute.xlu0 %937 }
 0x482   :  { %vm939_vm15 = vcmp.eq.s32.totalorder %v938_v53, 1 }
 0x488   :  { %v1837_v26 = vpop.eup %1836 }
 0x489   :  { %1684 = vmatmul.mubr.msk.f32.vlgmr.msra.gmra.mrb[8].mxu0 %vm190_vm1, %v1837_v26 }
 0x48a   :  { %1773 = vmatpush3.bf16.msk.msra.mxu0 %vm1979_vm4, %v2001_v25  ;;  %1697 = vmatprep.mubr.msk.f32.mxu0 %vm1863_vm6, %v1864_v22 }
 0x48b   :  { %1778 = vmatprep.subr.bf16.mxu0 %v1861_v18 }
 0x55c   :  { %v742_v32 = vpop.f32.mrb[8].mxu0 }
 0x55d   :  { %1838 = vlog2.f32 %v742_v32  ;;  %v1685_v34 = vpop.f32.mrb[9].mxu0  ;;  %v201_v32 = vmul.f32 %v2147_v30, %v2016_v33 }
 0x55f   :  { %v202_v34 = vsel %vm190_vm1, %v201_v32, 0.0 }
 0x567   :  { %v1839_v35 = vpop.eup %1838 }
 0x568   :  { %v748_v37 = vmul.f32 0.6931472, %v1839_v35  ;;  %v391_v35 = vsel %vm190_vm1, %v2051_v56, 0.0 }
 0x56a   :  { %v749_v40 = vadd.f32 %v748_v37, %v746_v36 }
 0x56c   :  { %v750_v41 = vadd.f32 %v749_v40, %v2104_v39 }
 0x56e   :  { %v756_v43 = vsel %vm755_vm14, %v750_v41, %v572_v9 }
 0x56f   :  { %v851_v44 = vsel %vm190_vm1, %v756_v43, -inf }
 0x570   :  { %852 = vmax.xlane.f32.xlu1 %v851_v44 }
 0x5fd   :  { %v853_v45 = vpop.xlane.xlu1 %852 }
 0x5fe   :  { %v854_v46 = vsub.f32 %v756_v43, %v853_v45  ;;  %v930_v51 = vadd.f32 %v2037_v42, %v853_v45 }
 0x600   :  { %v855_v47 = vmul.f32 1.442695, %v854_v46 }
 0x602   :  { %1840 = vpow2.f32 %v855_v47 }
 0x60c   :  { %v1841_v48 = vpop.eup %1840 }
 0x60d   :  { %1698 = vmatmul.mubr.msk.f32.vlgmr.msra.gmra.mrb[10].mxu0 %vm190_vm1, %v1841_v48 }
 0x60e   :  { %1781 = vmatpush3.bf16.msk.msra.mxu0 %vm1979_vm4, %v2001_v25  ;;  %1711 = vmatprep.mubr.msk.f32.mxu0 %vm1863_vm6, %v1864_v22 }
 0x60f   :  { %1786 = vmatprep.subr.bf16.mxu0 %v1861_v18 }
 0x6e0   :  { %v926_v10 = vpop.f32.mrb[10].mxu0 }
 0x6e1   :  { %1842 = vlog2.f32 %v926_v10  ;;  %v1699_v49 = vpop.f32.mrb[11].mxu0 }
 0x6eb   :  { %v1843_v50 = vpop.eup %1842 }
 0x6ec   :  { %v932_v52 = vmul.f32 0.6931472, %v1843_v50 }
 0x6ee   :  { %v933_v57 = vadd.f32 %v932_v52, %v930_v51  ;;  %v2174_v51 = vadd.f32 %v2097_v27, %v1946_v5  ;;  %v189_v27 = vmul.f32 %v2016_v33, %v1956_v12 }
 0x6f0   :  { %v934_v58 = vadd.f32 %v933_v57, %v2117_v54 }
 0x6f2   :  { %v940_v59 = vsel %vm939_vm15, %v934_v58, %v756_v43 }
 0x6f3   :  { %v1035_v61 = vsel %vm190_vm1, %v940_v59, -inf }
 0x6f4   :  { %1036 = vmax.xlane.f32.xlu1 %v1035_v61  ;;  %v1870_v61 = vmov 5  }
 0x705   :  { %1121 = vperm.xlu1 %1813, %v1119_v62   ;;  %v191_v62 = vsel %vm190_vm1, %v189_v27, 0.0 }
 0x709   :  { %1305 = vperm.xlu1 %1813, %v1303_v63   ;;  %v470_v63 = vmul.f32 %v2046_v55, %v2147_v30 }
 0x781   :  { %v1037_v0 = vpop.xlane.xlu1 %1036 }
 0x782   :  { %v1038_v1 = vsub.f32 %v940_v59, %v1037_v0  ;;  %v1114_v6 = vadd.f32 %v2037_v42, %v1037_v0 }
 0x784   :  { %v1039_v2 = vmul.f32 1.442695, %v1038_v1  ;;  %v471_v1 = vsel %vm190_vm1, %v470_v63, 0.0 }
 0x785   :  { %v1122_v16 = vpop.permute.xlu1 %1121 }
 0x786   :  { %1844 = vpow2.f32 %v1039_v2  ;;  %vm1123_vm3 = vcmp.eq.s32.totalorder %v1122_v16, 1 }
 0x789   :  { %v1306_v52 = vpop.permute.xlu1 %1305 }
 0x78a   :  { %vm1307_vm9 = vcmp.eq.s32.totalorder %v1306_v52, 1 }
 0x790   :  { %v1845_v3 = vpop.eup %1844 }
 0x791   :  { %1712 = vmatmul.mubr.msk.f32.vlgmr.msra.gmra.mrb[12].mxu0 %vm190_vm1, %v1845_v3 }
 0x792   :  { %1789 = vmatpush3.bf16.msk.msra.mxu0 %vm1979_vm4, %v2001_v25  ;;  %1725 = vmatprep.mubr.msk.f32.mxu0 %vm1863_vm6, %v1864_v22 }
 0x793   :  { %1794 = vmatprep.subr.bf16.mxu0 %v1861_v18 }
 0x864   :  { %v1110_v8 = vpop.f32.mrb[12].mxu0 }
 0x865   :  { %1846 = vlog2.f32 %v1110_v8  ;;  %v1713_v9 = vpop.f32.mrb[13].mxu0 }
 0x86f   :  { %v1847_v11 = vpop.eup %1846 }
 0x870   :  { %v1116_v13 = vmul.f32 0.6931472, %v1847_v11 }
 0x872   :  { %v1117_v21 = vadd.f32 %v1116_v13, %v1114_v6 }
 0x874   :  { %v1118_v23 = vadd.f32 %v1117_v21, %v2138_v15 }
 0x876   :  { %v1124_v24 = vsel %vm1123_vm3, %v1118_v23, %v940_v59  ;;  %v1869_v59 = vmov 4   ;;  %vm1402_vm3 = vcmp.gt.s32.totalorder %v1963_v14, 7 }
 0x877   :  { %v1219_v26 = vsel %vm190_vm1, %v1124_v24, -inf }
 0x878   :  { %1220 = vmax.xlane.f32.xlu0 %v1219_v26 }
 0x88e   :  { %477 = vperm.xlu0 %1814, %v1974_v17  }
 0x892   :  { %1818 = vset.pattern.permute.xlu0 %v1867_v28 }
 0x893   :  { %1213 = vperm.xlu0 %1818, %v1974_v17  }
 0x8b2   :  { %203 = vadd.xlane.f32.xlu0 %v202_v34 }
 0x8b6   :  { %392 = vadd.xlane.f32.xlu0 %v391_v35 }
 0x905   :  { %v1221_v36 = vpop.xlane.xlu0 %1220 }
 0x906   :  { %v1222_v37 = vsub.f32 %v1124_v24, %v1221_v36  ;;  %v1298_v49 = vadd.f32 %v2037_v42, %v1221_v36 }
 0x908   :  { %v1223_v38 = vmul.f32 1.442695, %v1222_v37 }
 0x90a   :  { %1848 = vpow2.f32 %v1223_v38  ;;  %v1487_v38 = vsel %vm1402_vm3, 1, %v1860_v4 }
 0x90d   :  { %v478_v40 = vpop.permute.xlu0 %477 }
 0x90e   :  { %vm479_vm8 = vcmp.eq.s32.totalorder %v2012_v31, %v478_v40 }
 0x90f   :  { %v1556_v41 = vsel %vm479_vm8, 1.0, %v1864_v22  ;;  %vm653_vm8 = vcmp.eq.s32.totalorder %v1963_v14, 3 }
 0x910   :  { %1677 = vmatmul.mubr.msk.f32.vlgmr.msra.gmra.mrb[8].mxu1 %vm190_vm1, %v1556_v41  ;;  %v574_v43 = vmul.f32 %v1556_v41, %v2068_v60  ;;  %v1868_v60 = vmov 3   ;;  %v654_v0 = vmul.f32 %v1556_v41, %v2147_v30 }
 0x911   :  { %1769 = vmatpush3.bf16.msk.msra.mxu1 %vm1979_vm4, %v1977_v19  ;;  %1690 = vmatprep.mubr.msk.f32.mxu1 %vm1863_vm6, %v1864_v22 }
 0x912   :  { %v575_v56 = vsel %vm190_vm1, %v574_v43, 0.0  ;;  %1774 = vmatprep.subr.bf16.mxu1 %v1861_v18  ;;  %1815 = vset.pattern.permute.xlu1 %v1868_v60  ;;  %v655_v2 = vsel %vm190_vm1, %v654_v0, 0.0  ;;  %v1214_v13 = vpop.permute.xlu0 %1213 }
 0x913   :  { %576 = vadd.xlane.f32.xlu0 %v575_v56  ;;  %vm1215_vm14 = vcmp.eq.s32.totalorder %v2012_v31, %v1214_v13 }
 0x914   :  { %v1849_v44 = vpop.eup %1848 }
 0x915   :  { %1726 = vmatmul.mubr.msk.f32.vlgmr.msra.gmra.mrb[14].mxu0 %vm190_vm1, %v1849_v44  ;;  %v1871_v44 = vmov 7  }
 0x916   :  { %1797 = vmatpush3.bf16.msk.msra.mxu0 %vm1979_vm4, %v2001_v25  ;;  %1739 = vmatprep.mubr.msk.f32.mxu0 %vm1863_vm6, %v1864_v22 }
 0x917   :  { %1819 = vset.pattern.permute.xlu0 %v1871_v44 }
 0x93f   :  { %v204_v20 = vpop.xlane.xlu0 %203 }
 0x9e3   :  { %v649_v45 = vpop.f32.mrb[8].mxu1 }
 0x9e4   :  { %v1678_v46 = vpop.f32.mrb[9].mxu1  ;;  %v757_v8 = vadd.f32 %v649_v45, %v2104_v39 }
 0x9e8   :  { %v1294_v47 = vpop.f32.mrb[14].mxu0 }
 0x9e9   :  { %1850 = vlog2.f32 %v1294_v47  ;;  %v1727_v48 = vpop.f32.mrb[15].mxu0 }
 0x9f3   :  { %v1851_v10 = vpop.eup %1850 }
 0x9f4   :  { %v1300_v50 = vmul.f32 0.6931472, %v1851_v10 }
 0x9f6   :  { %v1301_v25 = vadd.f32 %v1300_v50, %v1298_v49 }
 0x9f8   :  { %v1302_v53 = vadd.f32 %v1301_v25, %v2174_v51 }
 0x9fa   :  { %v2177_v57 = vsel %vm1307_vm9, %v1302_v53, %v1124_v24  ;;  %v2221_v24 = vsel %vm1215_vm14, 1.0, %v1864_v22  ;;  %vm837_vm9 = vcmp.eq.s32.totalorder %v1963_v14, 4  ;;  %vm1389_vm14 = vcmp.eq.s32.totalorder %v1963_v14, 7 }
 0x9fb   :  { %v1403_v58 = vsel %vm190_vm1, %v2177_v57, -inf  ;;  %v1390_v36 = vmul.f32 %v2221_v24, %v2147_v30 }
 0x9fc   :  { %1404 = vmax.xlane.f32.xlu1 %v1403_v58 }
 0x9fd   :  { %v1391_v37 = vsel %vm190_vm1, %v1390_v36, 0.0 }
 0xa0d   :  { %661 = vperm.xlu1 %1815, %v1974_v17  }
 0xa11   :  { %1816 = vset.pattern.permute.xlu1 %v1869_v59 }
 0xa12   :  { %845 = vperm.xlu1 %1816, %v1974_v17  }
 0xa16   :  { %1817 = vset.pattern.permute.xlu1 %v1870_v61 }
 0xa17   :  { %1029 = vperm.xlu1 %1817, %v1974_v17  }
 0xa1b   :  { %1820 = vset.pattern.permute.xlu1 %v1860_v4 }
 0xa3b   :  { %192 = vadd.xlane.f32.xlu1 %v191_v62 }
 0xa3f   :  { %472 = vadd.xlane.f32.xlu1 %v471_v1 }
 0xa43   :  { %656 = vadd.xlane.f32.xlu1 %v655_v2 }
 0xa89   :  { %v2193_v3 = vpop.xlane.xlu1 %1404 }
 0xa8a   :  { %v1406_v7 = vsub.f32 %v2177_v57, %v2193_v3 }
 0xa8c   :  { %v1407_v12 = vmul.f32 1.442695, %v1406_v7 }
 0xa8d   :  { %v662_v33 = vpop.permute.xlu1 %661 }
 0xa8e   :  { %1852 = vpow2.f32 %v1407_v12  ;;  %vm663_vm10 = vcmp.eq.s32.totalorder %v2012_v31, %v662_v33 }
 0xa8f   :  { %v1561_v55 = vsel %vm663_vm10, 1.0, %v1864_v22  ;;  %vm1021_vm10 = vcmp.eq.s32.totalorder %v1963_v14, 5 }
 0xa90   :  { %1691 = vmatmul.mubr.msk.f32.vlgmr.msra.gmra.mrb[10].mxu1 %vm190_vm1, %v1561_v55  ;;  %v838_v9 = vmul.f32 %v1561_v55, %v2147_v30  ;;  %v758_v11 = vmul.f32 %v1561_v55, %v757_v8 }
 0xa91   :  { %1777 = vmatpush3.bf16.msk.msra.mxu1 %vm1979_vm4, %v1977_v19  ;;  %v846_v6 = vpop.permute.xlu1 %845  ;;  %1704 = vmatprep.mubr.msk.f32.mxu1 %vm1863_vm6, %v1864_v22 }
 0xa92   :  { %vm847_vm11 = vcmp.eq.s32.totalorder %v2012_v31, %v846_v6  ;;  %v839_v39 = vsel %vm190_vm1, %v838_v9, 0.0  ;;  %v759_v16 = vsel %vm190_vm1, %v758_v11, 0.0  ;;  %1782 = vmatprep.subr.bf16.mxu1 %v1861_v18 }
 0xa93   :  { %v1566_v21 = vsel %vm847_vm11, 1.0, %v1864_v22  ;;  %840 = vadd.xlane.f32.xlu1 %v839_v39  ;;  %760 = vadd.xlane.f32.xlu0 %v759_v16  ;;  %vm1205_vm11 = vcmp.eq.s32.totalorder %v1963_v14, 6  ;;  %v171_v39 = vadd.f32 %v2099_v29, %v1946_v5  ;;  %v393_v5 = vpop.xlane.xlu0 %392 }
 0xa94   :  { %1705 = vmatmul.mubr.msk.f32.vlgmr.msra.gmra.mrb[12].mxu1 %vm190_vm1, %v1566_v21  ;;  %v1022_v23 = vmul.f32 %v1566_v21, %v2147_v30 }
 0xa95   :  { %1785 = vmatpush3.bf16.msk.msra.mxu1 %vm1979_vm4, %v1977_v19  ;;  %1718 = vmatprep.mubr.msk.f32.mxu1 %vm1863_vm6, %v1864_v22 }
 0xa96   :  { %v1030_v26 = vpop.permute.xlu1 %1029  ;;  %v1023_v28 = vsel %vm190_vm1, %v1022_v23, 0.0  ;;  %1790 = vmatprep.subr.bf16.mxu1 %v1861_v18 }
 0xa97   :  { %vm1031_vm15 = vcmp.eq.s32.totalorder %v2012_v31, %v1030_v26  ;;  %1024 = vadd.xlane.f32.xlu1 %v1023_v28  ;;  %v577_v29 = vpop.xlane.xlu0 %576 }
 0xa98   :  { %v1853_v32 = vpop.eup %1852  ;;  %v1571_v34 = vsel %vm1031_vm15, 1.0, %v1864_v22 }
 0xa99   :  { %1719 = vmatmul.mubr.msk.f32.vlgmr.msra.gmra.mrb[14].mxu1 %vm190_vm1, %v1571_v34  ;;  %1740 = vmatmul.mubr.msk.f32.vlgmr.msra.gmra.mrb[16].mxu0 %vm190_vm1, %v1853_v32  ;;  %v1206_v35 = vmul.f32 %v1571_v34, %v2147_v30  ;;  %v1482_v32 = vadd.f32 %v2037_v42, %v2193_v3 }
 0xa9a   :  { %1793 = vmatpush3.bf16.msk.msra.mxu1 %vm1979_vm4, %v1977_v19  ;;  %1732 = vmatprep.mubr.msk.f32.mxu1 %vm1863_vm6, %v1864_v22  ;;  %vm194_vm4 = vcmp.eq.s32.totalorder %v1963_v14, 1  ;;  %vm469_vm6 = vcmp.eq.s32.totalorder %v1963_v14, 2 }
 0xa9b   :  { %v1207_v18 = vsel %vm190_vm1, %v1206_v35, 0.0  ;;  %v205_v41 = vsel %vm194_vm4, %v204_v20, 0.0 }
 0xa9c   :  { %1208 = vadd.xlane.f32.xlu1 %v1207_v18 }
 0xa9d   :  { %1733 = vmatmul.mubr.msk.f32.vlgmr.msra.gmra.mrb[16].mxu1 %vm190_vm1, %v2221_v24 }
 0xaa0   :  { %1392 = vadd.xlane.f32.xlu1 %v1391_v37  ;;  %v578_v37 = vsel %vm482_vm5, %v577_v29, 0.0 }
 0xab1   :  { %1489 = vperm.xlu1 %1820, %v1487_v38  }
 0xac8   :  { %v2245_v19 = vpop.xlane.xlu1 %192 }
 0xacc   :  { %v473_v40 = vpop.xlane.xlu1 %472 }
 0xacd   :  { %v474_v43 = vsel %vm469_vm6, %v473_v40, 0.0 }
 0xace   :  { %v475_v56 = vadd.f32 %v474_v43, %v205_v41 }
 0xad0   :  { %v657_v60 = vpop.xlane.xlu1 %656 }
 0xad1   :  { %v658_v45 = vsel %vm653_vm8, %v657_v60, 0.0 }
 0xad2   :  { %v659_v46 = vadd.f32 %v658_v45, %v475_v56 }
 0xb20   :  { %v841_v47 = vpop.xlane.xlu1 %840  ;;  %v761_v18 = vpop.xlane.xlu0 %760 }
 0xb21   :  { %v842_v48 = vsel %vm837_vm9, %v841_v47, 0.0  ;;  %v762_v42 = vsel %vm666_vm13, %v761_v18, 0.0  ;;  %vm1521_vm13 = vcmp.eq.s32.totalorder %v2012_v31, 0 }
 0xb22   :  { %v843_v10 = vadd.f32 %v842_v48, %v659_v46 }
 0xb24   :  { %v1025_v49 = vpop.xlane.xlu1 %1024 }
 0xb25   :  { %v1026_v50 = vsel %vm1021_vm10, %v1025_v49, 0.0 }
 0xb26   :  { %v1027_v52 = vadd.f32 %v1026_v50, %v843_v10 }
 0xb29   :  { %v1209_v25 = vpop.xlane.xlu1 %1208 }
 0xb2a   :  { %v1210_v53 = vsel %vm1205_vm11, %v1209_v25, 0.0 }
 0xb2b   :  { %v1211_v58 = vadd.f32 %v1210_v53, %v1027_v52 }
 0xb2d   :  { %v1393_v59 = vpop.xlane.xlu1 %1392 }
 0xb2e   :  { %v1394_v61 = vsel %vm1389_vm14, %v1393_v59, 0.0 }
 0xb2f   :  { %v2254_v27 = vadd.f32 %v1394_v61, %v1211_v58 }
 0xb31   :  { %v1490_v60 = vpop.permute.xlu1 %1489 }
 0xb32   :  { %vm1491_vm5 = vcmp.eq.s32.totalorder %v1490_v60, 1 }
 0xb63   :  { %v833_v62 = vpop.f32.mrb[10].mxu1 }
 0xb64   :  { %v941_v63 = vadd.f32 %v833_v62, %v2117_v54  ;;  %v1692_v0 = vpop.f32.mrb[11].mxu1 }
 0xb66   :  { %v942_v1 = vmul.f32 %v1566_v21, %v941_v63 }
 0xb67   :  { %v1017_v2 = vpop.f32.mrb[12].mxu1 }
 0xb68   :  { %v1125_v7 = vadd.f32 %v1017_v2, %v2138_v15  ;;  %v1706_v12 = vpop.f32.mrb[13].mxu1  ;;  %v943_v33 = vsel %vm190_vm1, %v942_v1, 0.0 }
 0xb69   :  { %944 = vadd.xlane.f32.xlu0 %v943_v33 }
 0xb6a   :  { %v1126_v8 = vmul.f32 %v1571_v34, %v1125_v7 }
 0xb6c   :  { %v1201_v55 = vpop.f32.mrb[14].mxu1  ;;  %v1478_v9 = vpop.f32.mrb[16].mxu0  ;;  %v1127_v11 = vsel %vm190_vm1, %v1126_v8, 0.0 }
 0xb6d   :  { %v1309_v6 = vadd.f32 %v1201_v55, %v2174_v51  ;;  %1854 = vlog2.f32 %v1478_v9  ;;  %v1720_v13 = vpop.f32.mrb[15].mxu1  ;;  %1128 = vadd.xlane.f32.xlu0 %v1127_v11  ;;  %v1741_v54 = vpop.f32.mrb[17].mxu0 }
 0xb6f   :  { %v1310_v15 = vmul.f32 %v2221_v24, %v1309_v6  ;;  %v394_v24 = vsel %vm289_vm7, %v393_v5, 0.0 }
 0xb70   :  { %v1385_v16 = vpop.f32.mrb[16].mxu1  ;;  %v395_v36 = vadd.f32 %v394_v24, %v2245_v19 }
 0xb71   :  { %v1493_v21 = vadd.f32 %v1385_v16, %v171_v39  ;;  %v1311_v23 = vsel %vm190_vm1, %v1310_v15, 0.0  ;;  %v1734_v26 = vpop.f32.mrb[17].mxu1 }
 0xb72   :  { %1312 = vadd.xlane.f32.xlu0 %v1311_v23  ;;  %v579_v3 = vadd.f32 %v578_v37, %v395_v36 }
 0xb74   :  { %v763_v38 = vadd.f32 %v762_v42, %v579_v3 }
 0xb77   :  { %v1855_v28 = vpop.eup %1854 }
 0xb78   :  { %v1484_v51 = vmul.f32 0.6931472, %v1855_v28 }
 0xb7a   :  { %v1485_v34 = vadd.f32 %v1484_v51, %v1482_v32 }
 0xb7c   :  { %v1486_v35 = vadd.f32 %v1485_v34, %v171_v39 }
 0xb7e   :  { %v1492_v46 = vsel %vm1491_vm5, %v1486_v35, %v2177_v57 }
 0xb7f   :  { %v1507_v52 = vadd.f32 %v2147_v30, %v1492_v46 }
 0xb81   :  { %v1508_v25 = vsel %vm190_vm1, %v1507_v52, -inf }
 0xb88   :  { %1397 = vperm.xlu0 %1819, %v1974_v17  }
 0xb8c   :  { %1821 = vset.pattern.permute.xlu0 %v1860_v4 }
 0xbf6   :  { %v945_v20 = vpop.xlane.xlu0 %944 }
 0xbf7   :  { %v946_v4 = vsel %vm850_vm12, %v945_v20, 0.0  ;;  %vm1500_vm12 = vcmp.eq.s32.totalorder %v1963_v14, 8 }
 0xbf8   :  { %v947_v17 = vadd.f32 %v946_v4, %v763_v38 }
 0xbfa   :  { %v1129_v40 = vpop.xlane.xlu0 %1128 }
 0xbfb   :  { %v1130_v41 = vsel %vm1034_vm0, %v1129_v40, 0.0  ;;  %vm1528_vm0 = vcmask 15360  }
 0xbfc   :  { %v1131_v43 = vadd.f32 %v1130_v41, %v947_v17 }
 0xbff   :  { %v1313_v19 = vpop.xlane.xlu0 %1312 }
 0xc00   :  { %v1314_v56 = vsel %vm1218_vm2, %v1313_v19, 0.0 }
 0xc01   :  { %v1315_v44 = vadd.f32 %v1314_v56, %v1131_v43 }
 0xc07   :  { %v1398_v45 = vpop.permute.xlu0 %1397 }
 0xc08   :  { %vm1399_vm7 = vcmp.eq.s32.totalorder %v2012_v31, %v1398_v45 }
 0xc09   :  { %v1581_v47 = vsel %vm1399_vm7, 1.0, %v1864_v22 }
 0xc0a   :  { %v1501_v48 = vmul.f32 %v1581_v47, %v2147_v30  ;;  %v1494_v10 = vmul.f32 %v1581_v47, %v1493_v21 }
 0xc0c   :  { %v1502_v49 = vsel %vm190_vm1, %v1501_v48, 0.0  ;;  %v1495_v50 = vsel %vm190_vm1, %v1494_v10, 0.0 }
 0xc0d   :  { %1503 = vadd.xlane.f32.xlu0 %v1502_v49  ;;  %1496 = vadd.xlane.f32.xlu1 %v1495_v50 }
 0xc11   :  { %1509 = vmax.xlane.f32.xlu1 %v1508_v25 }
 0xc9a   :  { %v1504_v53 = vpop.xlane.xlu0 %1503  ;;  %v1497_v57 = vpop.xlane.xlu1 %1496 }
 0xc9b   :  { %v1505_v58 = vsel %vm1500_vm12, %v1504_v53, 0.0  ;;  %v1498_v22 = vsel %vm1402_vm3, %v1497_v57, 0.0 }
 0xc9c   :  { %v1506_v59 = vadd.f32 %v1505_v58, %v2254_v27  ;;  %v1499_v61 = vadd.f32 %v1498_v22, %v1315_v44 }
 0xc9e   :  { %v1520_v62 = vadd.f32 %v1506_v59, %v1499_v61  ;;  %v1510_v63 = vpop.xlane.xlu1 %1509 }
 0xc9f   :  { %v1511_v0 = vsub.f32 %v1507_v52, %v1510_v63 }
 0xca1   :  { %v1512_v30 = vmul.f32 1.442695, %v1511_v0 }
 0xca3   :  { %1856 = vpow2.f32 %v1512_v30 }
 0xcad   :  { %v1857_v1 = vpop.eup %1856 }
 0xcae   :  { %v1514_v2 = vsel %vm190_vm1, %v1857_v1, 0.0 }
 0xcaf   :  { %1515 = vadd.xlane.f32.xlu1 %v1514_v2 }
 0xcc0   :  { %1524 = vperm.xlu1 %1820, %v1520_v62  }
 0xd3c   :  { %v1516_v7 = vpop.xlane.xlu1 %1515 }
 0xd3d   :  { %1858 = vlog2.f32 %v1516_v7 }
 0xd40   :  { %v1525_v27 = vpop.permute.xlu1 %1524 }
 0xd47   :  { %v1859_v12 = vpop.eup %1858 }
 0xd48   :  { %v1518_v33 = vmul.f32 0.6931472, %v1859_v12 }
 0xd4a   :  { %v1519_v14 = vadd.f32 %v1518_v33, %v1510_v63 }
 0xd4c   :  { %v1527_v8 = vsel %vm1521_vm13, %v1519_v14, %v1525_v27 }
 0xd4d   :  { %1529 = vst.msk [vmem:[%s2309_s10] sm:$0xff] %vm1528_vm0, %v1527_v8 }

</bundles_post_ra>
